<compile_context>
chip_gen: v5e
topology: v5e:2x2
jax: 0.10.0
libtpu: 0.0.40
codegen_flags: <defaults>
</compile_context>

<pallas_src>
import functools

import numpy as np
import jax
import jax.numpy as jnp
from jax.experimental import pallas as pl
from jax.experimental.pallas import tpu as pltpu  # noqa: F401  (TPU backend)

LEAK = 0.2
MSTD_EPS = 1e-8
CIN_PAD = 8  # pad the tiny RGB channel dim for a clean MXU contraction


def _full_spec(shape):
    # whole-array block (no grid) -> index map returns all-zero block indices
    return pl.BlockSpec(shape, lambda *_: (0,) * len(shape))


# ----------------------------- fused Pallas kernel --------------------------

def _fused_disc_kernel(x_ref, w_rgb_ref, b_rgb_ref, s3_ref, w_c3_ref, std_map_ref,
                       b_c3_ref, s4_ref, w_c4_ref, b_c4_ref, w_lin_ref, b_lin_ref,
                       out_ref, *, n, p, c):
    npix = n * p

    # ---- fromRGB: equalized 1x1 conv as [N*P, cin_pad] x [cin_pad, C] matmul
    y = jnp.dot(x_ref[...], w_rgb_ref[...],
                preferred_element_type=jnp.float32) + b_rgb_ref[...]

    # ---- MinibatchSTD scalar (stays internal, never leaves VMEM) ------------
    # TODO(synk): MinibatchSTD source not provided; standard PGGAN variant
    # assumed (biased per-(c,h,w) std over the batch, eps inside sqrt, averaged
    # to one scalar appended as an extra channel).
    y3 = y.reshape(n, p, c)
    mu = jnp.mean(y3, axis=0, keepdims=True)
    var = jnp.mean((y3 - mu) ** 2, axis=0)
    s = jnp.mean(jnp.sqrt(var + MSTD_EPS)).reshape(1, 1)

    # ---- 3x3 pad-1 equalized conv + LeakyReLU, entirely in VMEM -------------
    # S3 is a constant 0/1 shift/pad matrix (exact), so each tap is a clean
    # [N*P, C] x [C, C] MXU matmul; the constant std channel is the rank-1
    # term  s * std_map.
    y_shift = jnp.dot(s3_ref[...], y, preferred_element_type=jnp.float32)  # [9*N*P, C]
    acc = b_c3_ref[...] + s * std_map_ref[...]                             # [N*P, C]
    for t in range(9):
        acc = acc + jnp.dot(y_shift[t * npix:(t + 1) * npix, :],
                            w_c3_ref[t * c:(t + 1) * c, :],
                            preferred_element_type=jnp.float32)
    h1 = jnp.where(acc >= 0.0, acc, LEAK * acc)                            # [N*P, C]

    # ---- 4x4 VALID equalized conv + LeakyReLU: 16 accumulating tap matmuls --
    # S4 selects row (example i, tap t) so no [N*P,C] -> [N,P*C] relayout.
    acc2 = jnp.broadcast_to(b_c4_ref[...], (n, c))
    for t in range(p):
        rows_t = jnp.dot(s4_ref[t * n:(t + 1) * n, :], h1,
                         preferred_element_type=jnp.float32)               # [N, C]
        acc2 = acc2 + jnp.dot(rows_t, w_c4_ref[t * c:(t + 1) * c, :],
                              preferred_element_type=jnp.float32)
    h2 = jnp.where(acc2 >= 0.0, acc2, LEAK * acc2)                         # [N, C]

    # ---- EqualizedLinear(C -> 1): row-wise dot (lane reduce on the XLU) -----
    out_ref[...] = jnp.sum(h2 * w_lin_ref[...], axis=-1, keepdims=True) + b_lin_ref[...]


# ------------------------------ parameters ----------------------------------

def init_params(key, cin=3, cdepth=64, out_dim=1):
    """Deterministic synthetic params in PyTorch layouts (OIHW / [out,in])."""
    ks = jax.random.split(key, 8)
    return {
        "w_rgb": jax.random.normal(ks[0], (cdepth, cin, 1, 1), jnp.float32),
        "b_rgb": 0.1 * jax.random.normal(ks[1], (cdepth,), jnp.float32),
        "w_c3": jax.random.normal(ks[2], (cdepth, cdepth + 1, 3, 3), jnp.float32),
        "b_c3": 0.1 * jax.random.normal(ks[3], (cdepth,), jnp.float32),
        "w_c4": jax.random.normal(ks[4], (cdepth, cdepth, 4, 4), jnp.float32),
        "b_c4": 0.1 * jax.random.normal(ks[5], (cdepth,), jnp.float32),
        "w_lin": jax.random.normal(ks[6], (out_dim, cdepth), jnp.float32),
        "b_lin": 0.1 * jax.random.normal(ks[7], (out_dim,), jnp.float32),
    }


def prepare_params(params, batch_size):
    """One-time host-side prep (hoisted out of the forward): fold equalized-LR
    He scales, lay out weights tap-major, build the constant shift/selection
    matrices and the std-channel contribution map."""
    C = params["w_rgb"].shape[0]
    cin = params["w_rgb"].shape[1]
    n, p = int(batch_size), 16
    npix = n * p

    s_rgb = np.sqrt(2.0 / (cin * 1 * 1))
    s_c3 = np.sqrt(2.0 / ((C + 1) * 9))
    s_c4 = np.sqrt(2.0 / (C * 16))
    s_lin = np.sqrt(2.0 / C)

    w_rgb = np.asarray(params["w_rgb"], np.float32) * s_rgb
    w_rgb = w_rgb[:, :, 0, 0].T                                   # [cin, C]
    w_rgb = np.pad(w_rgb, ((0, CIN_PAD - cin), (0, 0)))           # [8, C]

    w_c3_full = np.asarray(params["w_c3"], np.float32) * s_c3      # [C, C+1, 3, 3]
    w_c3 = w_c3_full[:, :C].transpose(2, 3, 1, 0).reshape(9 * C, C)  # tap-major (kh,kw,ci) x co
    w_std = w_c3_full[:, C].transpose(1, 2, 0).reshape(9, C)         # std-channel taps [9, C]

    # Valid-tap pattern of the 3x3 pad-1 conv on a 4x4 map, plus the constant
    # shift/pad matrix S3 (block-diagonal over the batch; exact 0/1 entries).
    hh, ww = np.divmod(np.arange(p), 4)
    valid = np.zeros((p, 9), np.float32)
    s3 = np.zeros((9 * npix, npix), np.float32)
    for t in range(9):
        dh, dw = t // 3 - 1, t % 3 - 1
        ok = (hh + dh >= 0) & (hh + dh < 4) & (ww + dw >= 0) & (ww + dw < 4)
        valid[:, t] = ok
        for i in range(n):
            for q in range(p):
                if ok[q]:
                    src = (hh[q] + dh) * 4 + (ww[q] + dw)
                    s3[t * npix + i * p + q, i * p + src] = 1.0
    std_map = np.tile(valid @ w_std, (n, 1))                       # [N*P, C]

    # Row-selection matrix for the 4x4 VALID conv: rows t*n+i pick h1 row i*p+t.
    s4 = np.zeros((p * n, npix), np.float32)
    for t in range(p):
        for i in range(n):
            s4[t * n + i, i * p + t] = 1.0

    w_c4 = (np.asarray(params["w_c4"], np.float32) * s_c4).transpose(2, 3, 1, 0).reshape(16 * C, C)
    w_lin = (np.asarray(params["w_lin"], np.float32) * s_lin).reshape(1, C)

    to = lambda a: jnp.asarray(a, jnp.float32)
    return {
        "w_rgb": to(w_rgb),
        "b_rgb": to(np.asarray(params["b_rgb"], np.float32).reshape(1, C)),
        "s3": to(s3),
        "w_c3": to(w_c3),
        "std_map": to(std_map),
        "b_c3": to(np.asarray(params["b_c3"], np.float32).reshape(1, C)),
        "s4": to(s4),
        "w_c4": to(w_c4),
        "b_c4": to(np.asarray(params["b_c4"], np.float32).reshape(1, C)),
        "w_lin": to(w_lin),
        "b_lin": to(np.asarray(params["b_lin"], np.float32).reshape(1, 1)),
    }


# ------------------------------ forward --------------------------------------

def pro_discriminator_forward(x_nchw, prep):
    """Single fused Pallas call; `prep` comes from prepare_params()."""
    N, cin, H, W = x_nchw.shape
    assert H == 4 and W == 4, "base-depth ProDiscriminator expects 4x4 input"
    C = prep["w_rgb"].shape[1]
    P = H * W
    NP = N * P
    assert prep["s3"].shape == (9 * NP, NP), "prep built for a different batch size"

    # NCHW -> channels-last slab [N*P, cin], zero-padded to CIN_PAD lanes.
    x = jnp.transpose(x_nchw, (0, 2, 3, 1)).reshape(NP, cin)
    x = jnp.pad(x, ((0, 0), (0, CIN_PAD - cin)))

    operands = (x, prep["w_rgb"], prep["b_rgb"], prep["s3"], prep["w_c3"],
                prep["std_map"], prep["b_c3"], prep["s4"], prep["w_c4"],
                prep["b_c4"], prep["w_lin"], prep["b_lin"])

    # ~0.5 MiB of operands total: the whole problem lives in VMEM, one dispatch.
    return pl.pallas_call(
        functools.partial(_fused_disc_kernel, n=N, p=P, c=C),
        out_shape=jax.ShapeDtypeStruct((N, 1), jnp.float32),
        in_specs=[_full_spec(op.shape) for op in operands],
        out_specs=_full_spec((N, 1)),
    )(*operands)


# --------------------------- pure-JAX reference ------------------------------

def reference_forward(x_nchw, params):
    hp = jax.lax.Precision.HIGHEST
    C = params["w_rgb"].shape[0]
    cin = params["w_rgb"].shape[1]
    s_rgb = np.sqrt(2.0 / cin)
    s_c3 = np.sqrt(2.0 / ((C + 1) * 9))
    s_c4 = np.sqrt(2.0 / (C * 16))
    s_lin = np.sqrt(2.0 / C)
    dn = ("NCHW", "OIHW", "NCHW")
    y = jax.lax.conv_general_dilated(x_nchw, params["w_rgb"] * s_rgb, (1, 1), "VALID",
                                     dimension_numbers=dn, precision=hp) \
        + params["b_rgb"].reshape(1, -1, 1, 1)
    mu = jnp.mean(y, axis=0, keepdims=True)
    var = jnp.mean((y - mu) ** 2, axis=0)
    sstd = jnp.mean(jnp.sqrt(var + MSTD_EPS))
    y = jnp.concatenate([y, jnp.full((y.shape[0], 1, y.shape[2], y.shape[3]), sstd)], axis=1)
    z = jax.lax.conv_general_dilated(y, params["w_c3"] * s_c3, (1, 1), ((1, 1), (1, 1)),
                                     dimension_numbers=dn, precision=hp) \
        + params["b_c3"].reshape(1, -1, 1, 1)
    z = jnp.where(z >= 0, z, LEAK * z)
    z = jax.lax.conv_general_dilated(z, params["w_c4"] * s_c4, (1, 1), "VALID",
                                     dimension_numbers=dn, precision=hp) \
        + params["b_c4"].reshape(1, -1, 1, 1)
    z = jnp.where(z >= 0, z, LEAK * z)
    z = z.reshape(z.shape[0], -1)
    return jnp.dot(z, (params["w_lin"] * s_lin).T, precision=hp) + params["b_lin"]


if __name__ == "__main__":
    key = jax.random.PRNGKey(0)
    kx, kp = jax.random.split(key)
    N, CIN, H, W, CDEPTH = 2, 3, 4, 4, 64  # small but forward-consistent (4x4 base res)
    x = jax.random.normal(kx, (N, CIN, H, W), jnp.float32)
    params = init_params(kp, cin=CIN, cdepth=CDEPTH, out_dim=1)

    prep = prepare_params(params, batch_size=N)        # one-time weight prep (hoisted)
    fwd = jax.jit(pro_discriminator_forward)
    out = jax.block_until_ready(fwd(x, prep))

    ref = reference_forward(x, params)
    if not np.allclose(np.asarray(out), np.asarray(ref), rtol=1e-4, atol=1e-4):
        raise AssertionError(
            f"Pallas/reference mismatch:\n{np.asarray(out)}\nvs\n{np.asarray(ref)}")
    print("KERNEL_OK")
</pallas_src>

<mosaic_0001>
module attributes {stable_mosaic.version = 11 : i64} {
  func.func @_fused_disc_kernel(%arg0: memref<32x8xf32, #tpu.memory_space<vmem>>, %arg1: memref<8x64xf32, #tpu.memory_space<vmem>>, %arg2: memref<1x64xf32, #tpu.memory_space<vmem>>, %arg3: memref<288x32xf32, #tpu.memory_space<vmem>>, %arg4: memref<576x64xf32, #tpu.memory_space<vmem>>, %arg5: memref<32x64xf32, #tpu.memory_space<vmem>>, %arg6: memref<1x64xf32, #tpu.memory_space<vmem>>, %arg7: memref<32x32xf32, #tpu.memory_space<vmem>>, %arg8: memref<1024x64xf32, #tpu.memory_space<vmem>>, %arg9: memref<1x64xf32, #tpu.memory_space<vmem>>, %arg10: memref<1x64xf32, #tpu.memory_space<vmem>>, %arg11: memref<1x1xf32, #tpu.memory_space<vmem>>, %arg12: memref<2x1xf32, #tpu.memory_space<vmem>>) attributes {dimension_semantics = [], scalar_prefetch = 0 : i64, scratch_operands = 0 : i64, tpu.core_type = #tpu.core_type<tc>} {
    %c0 = arith.constant 0 : index
    %c0_0 = arith.constant 0 : index
    %0 = vector.load %arg0[%c0, %c0_0] : memref<32x8xf32, #tpu.memory_space<vmem>>, vector<32x8xf32>
    %c0_1 = arith.constant 0 : index
    %c0_2 = arith.constant 0 : index
    %1 = vector.load %arg1[%c0_1, %c0_2] : memref<8x64xf32, #tpu.memory_space<vmem>>, vector<8x64xf32>
    %cst = arith.constant dense<0.000000e+00> : vector<32x64xf32>
    %2 = tpu.matmul %0, %1, %cst {dimension_numbers = #tpu.dot_dimension_numbers<[1], [0], [0], [1], [0, 0, 1, 1], [], []>} : vector<32x8xf32>, vector<8x64xf32>, vector<32x64xf32> -> vector<32x64xf32>
    %c0_3 = arith.constant 0 : index
    %c0_4 = arith.constant 0 : index
    %3 = vector.load %arg2[%c0_3, %c0_4] : memref<1x64xf32, #tpu.memory_space<vmem>>, vector<1x64xf32>
    %4 = vector.broadcast %3 : vector<1x64xf32> to vector<32x64xf32>
    %5 = arith.addf %2, %4 : vector<32x64xf32>
    %6 = vector.shape_cast %5 : vector<32x64xf32> to vector<2x16x64xf32>
    %cst_5 = arith.constant dense<0.000000e+00> : vector<16x64xf32>
    %7 = vector.multi_reduction <add>, %6, %cst_5 [0] : vector<2x16x64xf32> to vector<16x64xf32>
    %8 = vector.shape_cast %7 : vector<16x64xf32> to vector<1x16x64xf32>
    %cst_6 = arith.constant 2.000000e+00 : f32
    %9 = vector.broadcast %cst_6 : f32 to vector<1x16x64xf32>
    %10 = arith.divf %8, %9 : vector<1x16x64xf32>
    %11 = vector.broadcast %10 : vector<1x16x64xf32> to vector<2x16x64xf32>
    %12 = arith.subf %6, %11 : vector<2x16x64xf32>
    %13 = arith.mulf %12, %12 : vector<2x16x64xf32>
    %cst_7 = arith.constant dense<0.000000e+00> : vector<16x64xf32>
    %14 = vector.multi_reduction <add>, %13, %cst_7 [0] : vector<2x16x64xf32> to vector<16x64xf32>
    %cst_8 = arith.constant 2.000000e+00 : f32
    %15 = vector.broadcast %cst_8 : f32 to vector<16x64xf32>
    %16 = arith.divf %14, %15 : vector<16x64xf32>
    %cst_9 = arith.constant 9.99999993E-9 : f32
    %17 = vector.broadcast %cst_9 : f32 to vector<16x64xf32>
    %18 = arith.addf %16, %17 : vector<16x64xf32>
    %19 = math.sqrt %18 : vector<16x64xf32>
    %20 = vector.shape_cast %19 : vector<16x64xf32> to vector<1x16x64xf32>
    %cst_10 = arith.constant dense<0.000000e+00> : vector<1xf32>
    %21 = vector.multi_reduction <add>, %20, %cst_10 [1, 2] : vector<1x16x64xf32> to vector<1xf32>
    %22 = vector.shape_cast %21 : vector<1xf32> to vector<1x1x1xf32>
    %23 = vector.extract %22[0, 0, 0] : f32 from vector<1x1x1xf32>
    %cst_11 = arith.constant 1.024000e+03 : f32
    %24 = arith.divf %23, %cst_11 : f32
    %25 = vector.broadcast %24 : f32 to vector<1x1xf32>
    %c0_12 = arith.constant 0 : index
    %c0_13 = arith.constant 0 : index
    %26 = vector.load %arg3[%c0_12, %c0_13] : memref<288x32xf32, #tpu.memory_space<vmem>>, vector<288x32xf32>
    %cst_14 = arith.constant dense<0.000000e+00> : vector<288x64xf32>
    %27 = tpu.matmul %26, %5, %cst_14 {dimension_numbers = #tpu.dot_dimension_numbers<[1], [0], [0], [1], [0, 0, 1, 1], [], []>} : vector<288x32xf32>, vector<32x64xf32>, vector<288x64xf32> -> vector<288x64xf32>
    %c0_15 = arith.constant 0 : index
    %c0_16 = arith.constant 0 : index
    %28 = vector.load %arg6[%c0_15, %c0_16] : memref<1x64xf32, #tpu.memory_space<vmem>>, vector<1x64xf32>
    %c0_17 = arith.constant 0 : index
    %c0_18 = arith.constant 0 : index
    %29 = vector.load %arg5[%c0_17, %c0_18] : memref<32x64xf32, #tpu.memory_space<vmem>>, vector<32x64xf32>
    %30 = vector.broadcast %25 : vector<1x1xf32> to vector<32x64xf32>
    %31 = arith.mulf %30, %29 : vector<32x64xf32>
    %32 = vector.broadcast %28 : vector<1x64xf32> to vector<32x64xf32>
    %33 = arith.addf %32, %31 : vector<32x64xf32>
    %34 = vector.extract_strided_slice %27 {offsets = [0, 0], sizes = [32, 64], strides = [1, 1]} : vector<288x64xf32> to vector<32x64xf32>
    %c0_19 = arith.constant 0 : index
    %c0_20 = arith.constant 0 : index
    %35 = vector.load %arg4[%c0_19, %c0_20] : memref<576x64xf32, #tpu.memory_space<vmem>>, vector<64x64xf32>
    %cst_21 = arith.constant dense<0.000000e+00> : vector<32x64xf32>
    %36 = tpu.matmul %34, %35, %cst_21 {dimension_numbers = #tpu.dot_dimension_numbers<[1], [0], [0], [1], [0, 0, 1, 1], [], []>} : vector<32x64xf32>, vector<64x64xf32>, vector<32x64xf32> -> vector<32x64xf32>
    %37 = arith.addf %33, %36 : vector<32x64xf32>
    %38 = vector.extract_strided_slice %27 {offsets = [32, 0], sizes = [32, 64], strides = [1, 1]} : vector<288x64xf32> to vector<32x64xf32>
    %c64 = arith.constant 64 : index
    %c0_22 = arith.constant 0 : index
    %39 = vector.load %arg4[%c64, %c0_22] : memref<576x64xf32, #tpu.memory_space<vmem>>, vector<64x64xf32>
    %cst_23 = arith.constant dense<0.000000e+00> : vector<32x64xf32>
    %40 = tpu.matmul %38, %39, %cst_23 {dimension_numbers = #tpu.dot_dimension_numbers<[1], [0], [0], [1], [0, 0, 1, 1], [], []>} : vector<32x64xf32>, vector<64x64xf32>, vector<32x64xf32> -> vector<32x64xf32>
    %41 = arith.addf %37, %40 : vector<32x64xf32>
    %42 = vector.extract_strided_slice %27 {offsets = [64, 0], sizes = [32, 64], strides = [1, 1]} : vector<288x64xf32> to vector<32x64xf32>
    %c128 = arith.constant 128 : index
    %c0_24 = arith.constant 0 : index
    %43 = vector.load %arg4[%c128, %c0_24] : memref<576x64xf32, #tpu.memory_space<vmem>>, vector<64x64xf32>
    %cst_25 = arith.constant dense<0.000000e+00> : vector<32x64xf32>
    %44 = tpu.matmul %42, %43, %cst_25 {dimension_numbers = #tpu.dot_dimension_numbers<[1], [0], [0], [1], [0, 0, 1, 1], [], []>} : vector<32x64xf32>, vector<64x64xf32>, vector<32x64xf32> -> vector<32x64xf32>
    %45 = arith.addf %41, %44 : vector<32x64xf32>
    %46 = vector.extract_strided_slice %27 {offsets = [96, 0], sizes = [32, 64], strides = [1, 1]} : vector<288x64xf32> to vector<32x64xf32>
    %c192 = arith.constant 192 : index
    %c0_26 = arith.constant 0 : index
    %47 = vector.load %arg4[%c192, %c0_26] : memref<576x64xf32, #tpu.memory_space<vmem>>, vector<64x64xf32>
    %cst_27 = arith.constant dense<0.000000e+00> : vector<32x64xf32>
    %48 = tpu.matmul %46, %47, %cst_27 {dimension_numbers = #tpu.dot_dimension_numbers<[1], [0], [0], [1], [0, 0, 1, 1], [], []>} : vector<32x64xf32>, vector<64x64xf32>, vector<32x64xf32> -> vector<32x64xf32>
    %49 = arith.addf %45, %48 : vector<32x64xf32>
    %50 = vector.extract_strided_slice %27 {offsets = [128, 0], sizes = [32, 64], strides = [1, 1]} : vector<288x64xf32> to vector<32x64xf32>
    %c256 = arith.constant 256 : index
    %c0_28 = arith.constant 0 : index
    %51 = vector.load %arg4[%c256, %c0_28] : memref<576x64xf32, #tpu.memory_space<vmem>>, vector<64x64xf32>
    %cst_29 = arith.constant dense<0.000000e+00> : vector<32x64xf32>
    %52 = tpu.matmul %50, %51, %cst_29 {dimension_numbers = #tpu.dot_dimension_numbers<[1], [0], [0], [1], [0, 0, 1, 1], [], []>} : vector<32x64xf32>, vector<64x64xf32>, vector<32x64xf32> -> vector<32x64xf32>
    %53 = arith.addf %49, %52 : vector<32x64xf32>
    %54 = vector.extract_strided_slice %27 {offsets = [160, 0], sizes = [32, 64], strides = [1, 1]} : vector<288x64xf32> to vector<32x64xf32>
    %c320 = arith.constant 320 : index
    %c0_30 = arith.constant 0 : index
    %55 = vector.load %arg4[%c320, %c0_30] : memref<576x64xf32, #tpu.memory_space<vmem>>, vector<64x64xf32>
    %cst_31 = arith.constant dense<0.000000e+00> : vector<32x64xf32>
    %56 = tpu.matmul %54, %55, %cst_31 {dimension_numbers = #tpu.dot_dimension_numbers<[1], [0], [0], [1], [0, 0, 1, 1], [], []>} : vector<32x64xf32>, vector<64x64xf32>, vector<32x64xf32> -> vector<32x64xf32>
    %57 = arith.addf %53, %56 : vector<32x64xf32>
    %58 = vector.extract_strided_slice %27 {offsets = [192, 0], sizes = [32, 64], strides = [1, 1]} : vector<288x64xf32> to vector<32x64xf32>
    %c384 = arith.constant 384 : index
    %c0_32 = arith.constant 0 : index
    %59 = vector.load %arg4[%c384, %c0_32] : memref<576x64xf32, #tpu.memory_space<vmem>>, vector<64x64xf32>
    %cst_33 = arith.constant dense<0.000000e+00> : vector<32x64xf32>
    %60 = tpu.matmul %58, %59, %cst_33 {dimension_numbers = #tpu.dot_dimension_numbers<[1], [0], [0], [1], [0, 0, 1, 1], [], []>} : vector<32x64xf32>, vector<64x64xf32>, vector<32x64xf32> -> vector<32x64xf32>
    %61 = arith.addf %57, %60 : vector<32x64xf32>
    %62 = vector.extract_strided_slice %27 {offsets = [224, 0], sizes = [32, 64], strides = [1, 1]} : vector<288x64xf32> to vector<32x64xf32>
    %c448 = arith.constant 448 : index
    %c0_34 = arith.constant 0 : index
    %63 = vector.load %arg4[%c448, %c0_34] : memref<576x64xf32, #tpu.memory_space<vmem>>, vector<64x64xf32>
    %cst_35 = arith.constant dense<0.000000e+00> : vector<32x64xf32>
    %64 = tpu.matmul %62, %63, %cst_35 {dimension_numbers = #tpu.dot_dimension_numbers<[1], [0], [0], [1], [0, 0, 1, 1], [], []>} : vector<32x64xf32>, vector<64x64xf32>, vector<32x64xf32> -> vector<32x64xf32>
    %65 = arith.addf %61, %64 : vector<32x64xf32>
    %66 = vector.extract_strided_slice %27 {offsets = [256, 0], sizes = [32, 64], strides = [1, 1]} : vector<288x64xf32> to vector<32x64xf32>
    %c512 = arith.constant 512 : index
    %c0_36 = arith.constant 0 : index
    %67 = vector.load %arg4[%c512, %c0_36] : memref<576x64xf32, #tpu.memory_space<vmem>>, vector<64x64xf32>
    %cst_37 = arith.constant dense<0.000000e+00> : vector<32x64xf32>
    %68 = tpu.matmul %66, %67, %cst_37 {dimension_numbers = #tpu.dot_dimension_numbers<[1], [0], [0], [1], [0, 0, 1, 1], [], []>} : vector<32x64xf32>, vector<64x64xf32>, vector<32x64xf32> -> vector<32x64xf32>
    %69 = arith.addf %65, %68 : vector<32x64xf32>
    %cst_38 = arith.constant 0.000000e+00 : f32
    %70 = vector.broadcast %cst_38 : f32 to vector<32x64xf32>
    %71 = arith.cmpf oge, %69, %70 : vector<32x64xf32>
    %cst_39 = arith.constant 2.000000e-01 : f32
    %72 = vector.broadcast %cst_39 : f32 to vector<32x64xf32>
    %73 = arith.mulf %72, %69 : vector<32x64xf32>
    %74 = arith.select %71, %69, %73 : vector<32x64xi1>, vector<32x64xf32>
    %c0_40 = arith.constant 0 : index
    %c0_41 = arith.constant 0 : index
    %75 = vector.load %arg9[%c0_40, %c0_41] : memref<1x64xf32, #tpu.memory_space<vmem>>, vector<1x64xf32>
    %76 = vector.shape_cast %75 : vector<1x64xf32> to vector<1x64xf32>
    %77 = vector.broadcast %76 : vector<1x64xf32> to vector<2x64xf32>
    %c0_42 = arith.constant 0 : index
    %c0_43 = arith.constant 0 : index
    %78 = vector.load %arg7[%c0_42, %c0_43] : memref<32x32xf32, #tpu.memory_space<vmem>>, vector<2x32xf32>
    %cst_44 = arith.constant dense<0.000000e+00> : vector<2x64xf32>
    %79 = tpu.matmul %78, %74, %cst_44 {dimension_numbers = #tpu.dot_dimension_numbers<[1], [0], [0], [1], [0, 0, 1, 1], [], []>} : vector<2x32xf32>, vector<32x64xf32>, vector<2x64xf32> -> vector<2x64xf32>
    %c0_45 = arith.constant 0 : index
    %c0_46 = arith.constant 0 : index
    %80 = vector.load %arg8[%c0_45, %c0_46] : memref<1024x64xf32, #tpu.memory_space<vmem>>, vector<64x64xf32>
    %cst_47 = arith.constant dense<0.000000e+00> : vector<2x64xf32>
    %81 = tpu.matmul %79, %80, %cst_47 {dimension_numbers = #tpu.dot_dimension_numbers<[1], [0], [0], [1], [0, 0, 1, 1], [], []>} : vector<2x64xf32>, vector<64x64xf32>, vector<2x64xf32> -> vector<2x64xf32>
    %82 = arith.addf %77, %81 : vector<2x64xf32>
    %c2 = arith.constant 2 : index
    %c0_48 = arith.constant 0 : index
    %83 = vector.load %arg7[%c2, %c0_48] : memref<32x32xf32, #tpu.memory_space<vmem>>, vector<2x32xf32>
    %cst_49 = arith.constant dense<0.000000e+00> : vector<2x64xf32>
    %84 = tpu.matmul %83, %74, %cst_49 {dimension_numbers = #tpu.dot_dimension_numbers<[1], [0], [0], [1], [0, 0, 1, 1], [], []>} : vector<2x32xf32>, vector<32x64xf32>, vector<2x64xf32> -> vector<2x64xf32>
    %c64_50 = arith.constant 64 : index
    %c0_51 = arith.constant 0 : index
    %85 = vector.load %arg8[%c64_50, %c0_51] : memref<1024x64xf32, #tpu.memory_space<vmem>>, vector<64x64xf32>
    %cst_52 = arith.constant dense<0.000000e+00> : vector<2x64xf32>
    %86 = tpu.matmul %84, %85, %cst_52 {dimension_numbers = #tpu.dot_dimension_numbers<[1], [0], [0], [1], [0, 0, 1, 1], [], []>} : vector<2x64xf32>, vector<64x64xf32>, vector<2x64xf32> -> vector<2x64xf32>
    %87 = arith.addf %82, %86 : vector<2x64xf32>
    %c4 = arith.constant 4 : index
    %c0_53 = arith.constant 0 : index
    %88 = vector.load %arg7[%c4, %c0_53] : memref<32x32xf32, #tpu.memory_space<vmem>>, vector<2x32xf32>
    %cst_54 = arith.constant dense<0.000000e+00> : vector<2x64xf32>
    %89 = tpu.matmul %88, %74, %cst_54 {dimension_numbers = #tpu.dot_dimension_numbers<[1], [0], [0], [1], [0, 0, 1, 1], [], []>} : vector<2x32xf32>, vector<32x64xf32>, vector<2x64xf32> -> vector<2x64xf32>
    %c128_55 = arith.constant 128 : index
    %c0_56 = arith.constant 0 : index
    %90 = vector.load %arg8[%c128_55, %c0_56] : memref<1024x64xf32, #tpu.memory_space<vmem>>, vector<64x64xf32>
    %cst_57 = arith.constant dense<0.000000e+00> : vector<2x64xf32>
    %91 = tpu.matmul %89, %90, %cst_57 {dimension_numbers = #tpu.dot_dimension_numbers<[1], [0], [0], [1], [0, 0, 1, 1], [], []>} : vector<2x64xf32>, vector<64x64xf32>, vector<2x64xf32> -> vector<2x64xf32>
    %92 = arith.addf %87, %91 : vector<2x64xf32>
    %c6 = arith.constant 6 : index
    %c0_58 = arith.constant 0 : index
    %93 = vector.load %arg7[%c6, %c0_58] : memref<32x32xf32, #tpu.memory_space<vmem>>, vector<2x32xf32>
    %cst_59 = arith.constant dense<0.000000e+00> : vector<2x64xf32>
    %94 = tpu.matmul %93, %74, %cst_59 {dimension_numbers = #tpu.dot_dimension_numbers<[1], [0], [0], [1], [0, 0, 1, 1], [], []>} : vector<2x32xf32>, vector<32x64xf32>, vector<2x64xf32> -> vector<2x64xf32>
    %c192_60 = arith.constant 192 : index
    %c0_61 = arith.constant 0 : index
    %95 = vector.load %arg8[%c192_60, %c0_61] : memref<1024x64xf32, #tpu.memory_space<vmem>>, vector<64x64xf32>
    %cst_62 = arith.constant dense<0.000000e+00> : vector<2x64xf32>
    %96 = tpu.matmul %94, %95, %cst_62 {dimension_numbers = #tpu.dot_dimension_numbers<[1], [0], [0], [1], [0, 0, 1, 1], [], []>} : vector<2x64xf32>, vector<64x64xf32>, vector<2x64xf32> -> vector<2x64xf32>
    %97 = arith.addf %92, %96 : vector<2x64xf32>
    %c8 = arith.constant 8 : index
    %c0_63 = arith.constant 0 : index
    %98 = vector.load %arg7[%c8, %c0_63] : memref<32x32xf32, #tpu.memory_space<vmem>>, vector<2x32xf32>
    %cst_64 = arith.constant dense<0.000000e+00> : vector<2x64xf32>
    %99 = tpu.matmul %98, %74, %cst_64 {dimension_numbers = #tpu.dot_dimension_numbers<[1], [0], [0], [1], [0, 0, 1, 1], [], []>} : vector<2x32xf32>, vector<32x64xf32>, vector<2x64xf32> -> vector<2x64xf32>
    %c256_65 = arith.constant 256 : index
    %c0_66 = arith.constant 0 : index
    %100 = vector.load %arg8[%c256_65, %c0_66] : memref<1024x64xf32, #tpu.memory_space<vmem>>, vector<64x64xf32>
    %cst_67 = arith.constant dense<0.000000e+00> : vector<2x64xf32>
    %101 = tpu.matmul %99, %100, %cst_67 {dimension_numbers = #tpu.dot_dimension_numbers<[1], [0], [0], [1], [0, 0, 1, 1], [], []>} : vector<2x64xf32>, vector<64x64xf32>, vector<2x64xf32> -> vector<2x64xf32>
    %102 = arith.addf %97, %101 : vector<2x64xf32>
    %c10 = arith.constant 10 : index
    %c0_68 = arith.constant 0 : index
    %103 = vector.load %arg7[%c10, %c0_68] : memref<32x32xf32, #tpu.memory_space<vmem>>, vector<2x32xf32>
    %cst_69 = arith.constant dense<0.000000e+00> : vector<2x64xf32>
    %104 = tpu.matmul %103, %74, %cst_69 {dimension_numbers = #tpu.dot_dimension_numbers<[1], [0], [0], [1], [0, 0, 1, 1], [], []>} : vector<2x32xf32>, vector<32x64xf32>, vector<2x64xf32> -> vector<2x64xf32>
    %c320_70 = arith.constant 320 : index
    %c0_71 = arith.constant 0 : index
    %105 = vector.load %arg8[%c320_70, %c0_71] : memref<1024x64xf32, #tpu.memory_space<vmem>>, vector<64x64xf32>
    %cst_72 = arith.constant dense<0.000000e+00> : vector<2x64xf32>
    %106 = tpu.matmul %104, %105, %cst_72 {dimension_numbers = #tpu.dot_dimension_numbers<[1], [0], [0], [1], [0, 0, 1, 1], [], []>} : vector<2x64xf32>, vector<64x64xf32>, vector<2x64xf32> -> vector<2x64xf32>
    %107 = arith.addf %102, %106 : vector<2x64xf32>
    %c12 = arith.constant 12 : index
    %c0_73 = arith.constant 0 : index
    %108 = vector.load %arg7[%c12, %c0_73] : memref<32x32xf32, #tpu.memory_space<vmem>>, vector<2x32xf32>
    %cst_74 = arith.constant dense<0.000000e+00> : vector<2x64xf32>
    %109 = tpu.matmul %108, %74, %cst_74 {dimension_numbers = #tpu.dot_dimension_numbers<[1], [0], [0], [1], [0, 0, 1, 1], [], []>} : vector<2x32xf32>, vector<32x64xf32>, vector<2x64xf32> -> vector<2x64xf32>
    %c384_75 = arith.constant 384 : index
    %c0_76 = arith.constant 0 : index
    %110 = vector.load %arg8[%c384_75, %c0_76] : memref<1024x64xf32, #tpu.memory_space<vmem>>, vector<64x64xf32>
    %cst_77 = arith.constant dense<0.000000e+00> : vector<2x64xf32>
    %111 = tpu.matmul %109, %110, %cst_77 {dimension_numbers = #tpu.dot_dimension_numbers<[1], [0], [0], [1], [0, 0, 1, 1], [], []>} : vector<2x64xf32>, vector<64x64xf32>, vector<2x64xf32> -> vector<2x64xf32>
    %112 = arith.addf %107, %111 : vector<2x64xf32>
    %c14 = arith.constant 14 : index
    %c0_78 = arith.constant 0 : index
    %113 = vector.load %arg7[%c14, %c0_78] : memref<32x32xf32, #tpu.memory_space<vmem>>, vector<2x32xf32>
    %cst_79 = arith.constant dense<0.000000e+00> : vector<2x64xf32>
    %114 = tpu.matmul %113, %74, %cst_79 {dimension_numbers = #tpu.dot_dimension_numbers<[1], [0], [0], [1], [0, 0, 1, 1], [], []>} : vector<2x32xf32>, vector<32x64xf32>, vector<2x64xf32> -> vector<2x64xf32>
    %c448_80 = arith.constant 448 : index
    %c0_81 = arith.constant 0 : index
    %115 = vector.load %arg8[%c448_80, %c0_81] : memref<1024x64xf32, #tpu.memory_space<vmem>>, vector<64x64xf32>
    %cst_82 = arith.constant dense<0.000000e+00> : vector<2x64xf32>
    %116 = tpu.matmul %114, %115, %cst_82 {dimension_numbers = #tpu.dot_dimension_numbers<[1], [0], [0], [1], [0, 0, 1, 1], [], []>} : vector<2x64xf32>, vector<64x64xf32>, vector<2x64xf32> -> vector<2x64xf32>
    %117 = arith.addf %112, %116 : vector<2x64xf32>
    %c16 = arith.constant 16 : index
    %c0_83 = arith.constant 0 : index
    %118 = vector.load %arg7[%c16, %c0_83] : memref<32x32xf32, #tpu.memory_space<vmem>>, vector<2x32xf32>
    %cst_84 = arith.constant dense<0.000000e+00> : vector<2x64xf32>
    %119 = tpu.matmul %118, %74, %cst_84 {dimension_numbers = #tpu.dot_dimension_numbers<[1], [0], [0], [1], [0, 0, 1, 1], [], []>} : vector<2x32xf32>, vector<32x64xf32>, vector<2x64xf32> -> vector<2x64xf32>
    %c512_85 = arith.constant 512 : index
    %c0_86 = arith.constant 0 : index
    %120 = vector.load %arg8[%c512_85, %c0_86] : memref<1024x64xf32, #tpu.memory_space<vmem>>, vector<64x64xf32>
    %cst_87 = arith.constant dense<0.000000e+00> : vector<2x64xf32>
    %121 = tpu.matmul %119, %120, %cst_87 {dimension_numbers = #tpu.dot_dimension_numbers<[1], [0], [0], [1], [0, 0, 1, 1], [], []>} : vector<2x64xf32>, vector<64x64xf32>, vector<2x64xf32> -> vector<2x64xf32>
    %122 = arith.addf %117, %121 : vector<2x64xf32>
    %c18 = arith.constant 18 : index
    %c0_88 = arith.constant 0 : index
    %123 = vector.load %arg7[%c18, %c0_88] : memref<32x32xf32, #tpu.memory_space<vmem>>, vector<2x32xf32>
    %cst_89 = arith.constant dense<0.000000e+00> : vector<2x64xf32>
    %124 = tpu.matmul %123, %74, %cst_89 {dimension_numbers = #tpu.dot_dimension_numbers<[1], [0], [0], [1], [0, 0, 1, 1], [], []>} : vector<2x32xf32>, vector<32x64xf32>, vector<2x64xf32> -> vector<2x64xf32>
    %c576 = arith.constant 576 : index
    %c0_90 = arith.constant 0 : index
    %125 = vector.load %arg8[%c576, %c0_90] : memref<1024x64xf32, #tpu.memory_space<vmem>>, vector<64x64xf32>
    %cst_91 = arith.constant dense<0.000000e+00> : vector<2x64xf32>
    %126 = tpu.matmul %124, %125, %cst_91 {dimension_numbers = #tpu.dot_dimension_numbers<[1], [0], [0], [1], [0, 0, 1, 1], [], []>} : vector<2x64xf32>, vector<64x64xf32>, vector<2x64xf32> -> vector<2x64xf32>
    %127 = arith.addf %122, %126 : vector<2x64xf32>
    %c20 = arith.constant 20 : index
    %c0_92 = arith.constant 0 : index
    %128 = vector.load %arg7[%c20, %c0_92] : memref<32x32xf32, #tpu.memory_space<vmem>>, vector<2x32xf32>
    %cst_93 = arith.constant dense<0.000000e+00> : vector<2x64xf32>
    %129 = tpu.matmul %128, %74, %cst_93 {dimension_numbers = #tpu.dot_dimension_numbers<[1], [0], [0], [1], [0, 0, 1, 1], [], []>} : vector<2x32xf32>, vector<32x64xf32>, vector<2x64xf32> -> vector<2x64xf32>
    %c640 = arith.constant 640 : index
    %c0_94 = arith.constant 0 : index
    %130 = vector.load %arg8[%c640, %c0_94] : memref<1024x64xf32, #tpu.memory_space<vmem>>, vector<64x64xf32>
    %cst_95 = arith.constant dense<0.000000e+00> : vector<2x64xf32>
    %131 = tpu.matmul %129, %130, %cst_95 {dimension_numbers = #tpu.dot_dimension_numbers<[1], [0], [0], [1], [0, 0, 1, 1], [], []>} : vector<2x64xf32>, vector<64x64xf32>, vector<2x64xf32> -> vector<2x64xf32>
    %132 = arith.addf %127, %131 : vector<2x64xf32>
    %c22 = arith.constant 22 : index
    %c0_96 = arith.constant 0 : index
    %133 = vector.load %arg7[%c22, %c0_96] : memref<32x32xf32, #tpu.memory_space<vmem>>, vector<2x32xf32>
    %cst_97 = arith.constant dense<0.000000e+00> : vector<2x64xf32>
    %134 = tpu.matmul %133, %74, %cst_97 {dimension_numbers = #tpu.dot_dimension_numbers<[1], [0], [0], [1], [0, 0, 1, 1], [], []>} : vector<2x32xf32>, vector<32x64xf32>, vector<2x64xf32> -> vector<2x64xf32>
    %c704 = arith.constant 704 : index
    %c0_98 = arith.constant 0 : index
    %135 = vector.load %arg8[%c704, %c0_98] : memref<1024x64xf32, #tpu.memory_space<vmem>>, vector<64x64xf32>
    %cst_99 = arith.constant dense<0.000000e+00> : vector<2x64xf32>
    %136 = tpu.matmul %134, %135, %cst_99 {dimension_numbers = #tpu.dot_dimension_numbers<[1], [0], [0], [1], [0, 0, 1, 1], [], []>} : vector<2x64xf32>, vector<64x64xf32>, vector<2x64xf32> -> vector<2x64xf32>
    %137 = arith.addf %132, %136 : vector<2x64xf32>
    %c24 = arith.constant 24 : index
    %c0_100 = arith.constant 0 : index
    %138 = vector.load %arg7[%c24, %c0_100] : memref<32x32xf32, #tpu.memory_space<vmem>>, vector<2x32xf32>
    %cst_101 = arith.constant dense<0.000000e+00> : vector<2x64xf32>
    %139 = tpu.matmul %138, %74, %cst_101 {dimension_numbers = #tpu.dot_dimension_numbers<[1], [0], [0], [1], [0, 0, 1, 1], [], []>} : vector<2x32xf32>, vector<32x64xf32>, vector<2x64xf32> -> vector<2x64xf32>
    %c768 = arith.constant 768 : index
    %c0_102 = arith.constant 0 : index
    %140 = vector.load %arg8[%c768, %c0_102] : memref<1024x64xf32, #tpu.memory_space<vmem>>, vector<64x64xf32>
    %cst_103 = arith.constant dense<0.000000e+00> : vector<2x64xf32>
    %141 = tpu.matmul %139, %140, %cst_103 {dimension_numbers = #tpu.dot_dimension_numbers<[1], [0], [0], [1], [0, 0, 1, 1], [], []>} : vector<2x64xf32>, vector<64x64xf32>, vector<2x64xf32> -> vector<2x64xf32>
    %142 = arith.addf %137, %141 : vector<2x64xf32>
    %c26 = arith.constant 26 : index
    %c0_104 = arith.constant 0 : index
    %143 = vector.load %arg7[%c26, %c0_104] : memref<32x32xf32, #tpu.memory_space<vmem>>, vector<2x32xf32>
    %cst_105 = arith.constant dense<0.000000e+00> : vector<2x64xf32>
    %144 = tpu.matmul %143, %74, %cst_105 {dimension_numbers = #tpu.dot_dimension_numbers<[1], [0], [0], [1], [0, 0, 1, 1], [], []>} : vector<2x32xf32>, vector<32x64xf32>, vector<2x64xf32> -> vector<2x64xf32>
    %c832 = arith.constant 832 : index
    %c0_106 = arith.constant 0 : index
    %145 = vector.load %arg8[%c832, %c0_106] : memref<1024x64xf32, #tpu.memory_space<vmem>>, vector<64x64xf32>
    %cst_107 = arith.constant dense<0.000000e+00> : vector<2x64xf32>
    %146 = tpu.matmul %144, %145, %cst_107 {dimension_numbers = #tpu.dot_dimension_numbers<[1], [0], [0], [1], [0, 0, 1, 1], [], []>} : vector<2x64xf32>, vector<64x64xf32>, vector<2x64xf32> -> vector<2x64xf32>
    %147 = arith.addf %142, %146 : vector<2x64xf32>
    %c28 = arith.constant 28 : index
    %c0_108 = arith.constant 0 : index
    %148 = vector.load %arg7[%c28, %c0_108] : memref<32x32xf32, #tpu.memory_space<vmem>>, vector<2x32xf32>
    %cst_109 = arith.constant dense<0.000000e+00> : vector<2x64xf32>
    %149 = tpu.matmul %148, %74, %cst_109 {dimension_numbers = #tpu.dot_dimension_numbers<[1], [0], [0], [1], [0, 0, 1, 1], [], []>} : vector<2x32xf32>, vector<32x64xf32>, vector<2x64xf32> -> vector<2x64xf32>
    %c896 = arith.constant 896 : index
    %c0_110 = arith.constant 0 : index
    %150 = vector.load %arg8[%c896, %c0_110] : memref<1024x64xf32, #tpu.memory_space<vmem>>, vector<64x64xf32>
    %cst_111 = arith.constant dense<0.000000e+00> : vector<2x64xf32>
    %151 = tpu.matmul %149, %150, %cst_111 {dimension_numbers = #tpu.dot_dimension_numbers<[1], [0], [0], [1], [0, 0, 1, 1], [], []>} : vector<2x64xf32>, vector<64x64xf32>, vector<2x64xf32> -> vector<2x64xf32>
    %152 = arith.addf %147, %151 : vector<2x64xf32>
    %c30 = arith.constant 30 : index
    %c0_112 = arith.constant 0 : index
    %153 = vector.load %arg7[%c30, %c0_112] : memref<32x32xf32, #tpu.memory_space<vmem>>, vector<2x32xf32>
    %cst_113 = arith.constant dense<0.000000e+00> : vector<2x64xf32>
    %154 = tpu.matmul %153, %74, %cst_113 {dimension_numbers = #tpu.dot_dimension_numbers<[1], [0], [0], [1], [0, 0, 1, 1], [], []>} : vector<2x32xf32>, vector<32x64xf32>, vector<2x64xf32> -> vector<2x64xf32>
    %c960 = arith.constant 960 : index
    %c0_114 = arith.constant 0 : index
    %155 = vector.load %arg8[%c960, %c0_114] : memref<1024x64xf32, #tpu.memory_space<vmem>>, vector<64x64xf32>
    %cst_115 = arith.constant dense<0.000000e+00> : vector<2x64xf32>
    %156 = tpu.matmul %154, %155, %cst_115 {dimension_numbers = #tpu.dot_dimension_numbers<[1], [0], [0], [1], [0, 0, 1, 1], [], []>} : vector<2x64xf32>, vector<64x64xf32>, vector<2x64xf32> -> vector<2x64xf32>
    %157 = arith.addf %152, %156 : vector<2x64xf32>
    %cst_116 = arith.constant 0.000000e+00 : f32
    %158 = vector.broadcast %cst_116 : f32 to vector<2x64xf32>
    %159 = arith.cmpf oge, %157, %158 : vector<2x64xf32>
    %cst_117 = arith.constant 2.000000e-01 : f32
    %160 = vector.broadcast %cst_117 : f32 to vector<2x64xf32>
    %161 = arith.mulf %160, %157 : vector<2x64xf32>
    %162 = arith.select %159, %157, %161 : vector<2x64xi1>, vector<2x64xf32>
    %c0_118 = arith.constant 0 : index
    %c0_119 = arith.constant 0 : index
    %163 = vector.load %arg10[%c0_118, %c0_119] : memref<1x64xf32, #tpu.memory_space<vmem>>, vector<1x64xf32>
    %164 = vector.broadcast %163 : vector<1x64xf32> to vector<2x64xf32>
    %165 = arith.mulf %162, %164 : vector<2x64xf32>
    %cst_120 = arith.constant dense<0.000000e+00> : vector<2xf32>
    %166 = vector.multi_reduction <add>, %165, %cst_120 [1] : vector<2x64xf32> to vector<2xf32>
    %167 = vector.shape_cast %166 : vector<2xf32> to vector<2x1xf32>
    %c0_121 = arith.constant 0 : index
    %c0_122 = arith.constant 0 : index
    %168 = vector.load %arg11[%c0_121, %c0_122] : memref<1x1xf32, #tpu.memory_space<vmem>>, vector<1x1xf32>
    %169 = vector.broadcast %168 : vector<1x1xf32> to vector<2x1xf32>
    %170 = arith.addf %167, %169 : vector<2x1xf32>
    %c0_123 = arith.constant 0 : index
    %c0_124 = arith.constant 0 : index
    %171 = vector.load %arg12[%c0_123, %c0_124] : memref<2x1xf32, #tpu.memory_space<vmem>>, vector<2x1xf32>
    tpu.vector_store %arg12[%c0_123, %c0_124], %170 {strides = array<i32>} : memref<2x1xf32, #tpu.memory_space<vmem>>, vector<2x1xf32>,
    return
  }
}

</mosaic_0001>

<bundles_post_ra>
// kernel: pro_discriminator_forward.1
= control target key start
LH: loop header
LB: loop body
LE: loop exit
PB: predicated region body
PF: predicated region fallthrough
CT: control target
= control target key end

     0   :  { %vm52_vm0 = vcmask 64512   ;;  %v2004_v5 = vmov 2.0   ;;  %vm94_vm1 = vcmask 523264   ;;  %vm209_vm3 = vcmask 261120   ;;  %s3091_s1 = inlined_call_operand.vmem [shape: f32[8,64], index: 1, kind: input, shape index: {}]   ;;  %s3092_s0 = inlined_call_operand.vmem [shape: f32[32,8], index: 0, kind: input, shape index: {}]   ;;  %s3093_s2 = inlined_call_operand.vmem [shape: f32[1,64], index: 2, kind: input, shape index: {}]   ;;  %s3094_s3 = inlined_call_operand.vmem [shape: f32[288,32], index: 3, kind: input, shape index: {}]   ;;  %s3095_s4 = inlined_call_operand.vmem [shape: f32[576,64], index: 4, kind: input, shape index: {}]   ;;  %s3096_s6 = inlined_call_operand.vmem [shape: f32[1,64], index: 6, kind: input, shape index: {}]   ;;  %s3097_s5 = inlined_call_operand.vmem [shape: f32[32,64], index: 5, kind: input, shape index: {}]   ;;  %s3098_s8 = inlined_call_operand.vmem [shape: f32[1024,64], index: 8, kind: input, shape index: {}]   ;;  %s3099_s7 = inlined_call_operand.vmem [shape: f32[32,32], index: 7, kind: input, shape index: {}]   ;;  %s3100_s9 = inlined_call_operand.vmem [shape: f32[1,64], index: 9, kind: input, shape index: {}]   ;;  %s3101_s10 = inlined_call_operand.vmem [shape: f32[1,64], index: 10, kind: input, shape index: {}]   ;;  %s3102_s11 = inlined_call_operand.<no memory space> [shape: f32[1,1], index: 11, kind: input, shape index: {}]   ;;  %s3103_s12 = inlined_call_operand.vmem [shape: f32[2,1], index: 12, kind: output, shape index: {}]  }
   0x1   :  { %v47_v0 = vld [vmem:[%s3091_s1] sm:$0xff]  ;;  %v44_v1 = vld [vmem:[%s3092_s0 + $0x8] sm:$0xff]  ;;  %v45_v3 = vld [vmem:[%s3092_s0 + $0x10] sm:$0xff]  ;;  %1996 = vrcp.f32 %v2004_v5  ;;  %vm1857_vm14 = vcmask 517120   ;;  %vm1866_vm15 = vcmask 1024  }
   0x2   :  { %1980 = vmatpush.msra.mxu2 %v47_v0  ;;  %80 = vmatpush.msra.mxu0 %v47_v0  ;;  %v43_v2 = vld [vmem:[%s3092_s0] sm:$0xff]  ;;  %v46_v4 = vld [vmem:[%s3092_s0 + $0x18] sm:$0xff]  ;;  %v178_v38 = vld [vmem:[%s3094_s3 + $0x28] sm:$0xff] }
   0x3   :  { %1873 = vmatmul.msk.f32.vlgmr.msra.gmra.mxu2 %vm52_vm0, %v44_v1  ;;  %1872 = vmatmul.msk.f32.vlgmr.msra.gmra.mxu0 %vm52_vm0, %v43_v2  ;;  %v1991_v11 = vld [vmem:[%s3093_s2] ss:$0 sm:$0xff]  ;;  %v174_v48 = vld [vmem:[%s3094_s3 + $0x8] sm:$0xff]  ;;  %v179_v49 = vld [vmem:[%s3094_s3 + $0x30] sm:$0xff] }
   0x4   :  { %v173_v37 = vld [vmem:[%s3094_s3] sm:$0xff]  ;;  %v175_v55 = vld [vmem:[%s3094_s3 + $0x10] sm:$0xff]  ;;  %v180_v56 = vld [vmem:[%s3094_s3 + $0x38] sm:$0xff] }
   0x5   :  { %v176_v0 = vld [vmem:[%s3094_s3 + $0x18] sm:$0xff]  ;;  %v181_v1 = vld [vmem:[%s3094_s3 + $0x40] sm:$0xff] }
   0x7   :  { %v1997_v6 = vpop.eup %1996 }
   0x8   :  { %v102_v7 = vmul.f32 2.0, %v1997_v6  ;;  %vm106_vm2 = vweird.f32 %v1997_v6 }
   0xa   :  { %v103_v8 = vsub.f32 1.0, %v102_v7 }
   0xb   :  { %1874 = vmatmul.msk.f32.gmra.mxu2 %vm52_vm0, %v45_v3 }
   0xc   :  { %v104_v12 = vmul.f32 %v1997_v6, %v103_v8 }
   0xe   :  { %v105_v14 = vadd.f32 %v1997_v6, %v104_v12 }
  0x10   :  { %v107_v19 = vsel %vm106_vm2, %v1997_v6, %v105_v14 }
  0x13   :  { %1875 = vmatmul.msk.f32.gmra.mxu2 %vm52_vm0, %v46_v4 }
  0x80   :  { %v82_v10 = vpop.f32.mrf.mxu0 }
  0x81   :  { %v83_v13 = vadd.f32 %v1991_v11, %v82_v10  ;;  %v177_v10 = vld [vmem:[%s3094_s3 + $0x20] sm:$0xff] }
  0x83   :  { %v95_v16 = vsel %vm94_vm1, %v83_v13, 0.0 }
  0x86   :  { %v85_v9 = vpop.f32.mrf.mxu2 }
  0x87   :  { %v86_v22 = vadd.f32 %v1991_v11, %v85_v9 }
  0x89   :  { %v98_v29 = vsel %vm94_vm1, %v86_v22, 0.0 }
  0x8e   :  { %v88_v15 = vpop.f32.mrf.mxu2 }
  0x8f   :  { %v89_v17 = vadd.f32 %v1991_v11, %v88_v15 }
  0x91   :  { %v96_v18 = vsel %vm94_vm1, %v89_v17, 0.0 }
  0x92   :  { %v97_v20 = vadd.f32 %v96_v18, %v95_v16  ;;  %v183_v16 = vld [vmem:[%s3094_s3 + $0x50] sm:$0xff]  ;;  %v185_v18 = vld [vmem:[%s3094_s3 + $0x60] sm:$0xff] }
  0x94   :  { %v108_v21 = vmul.f32 %v107_v19, %v97_v20  ;;  %v187_v20 = vld [vmem:[%s3094_s3 + $0x70] sm:$0xff] }
  0x96   :  { %v110_v23 = vsub.f32 %v83_v13, %v108_v21  ;;  %v112_v24 = vsub.f32 %v89_v17, %v108_v21  ;;  %v91_v25 = vpop.f32.mrf.mxu2  ;;  %v467_v21 = vld [vmem:[%s3095_s4 + $0x38] sm:$0xff] }
  0x97   :  { %v92_v26 = vadd.f32 %v1991_v11, %v91_v25  ;;  %v182_v11 = vld [vmem:[%s3094_s3 + $0x48] sm:$0xff]  ;;  %488 = vmatpush.msrb.mxu2 %v467_v21  ;;  %v464_v25 = vld [vmem:[%s3095_s4 + $0x20] sm:$0xff] }
  0x98   :  { %v114_v27 = vmul.f32 %v110_v23, %v110_v23  ;;  %v116_v28 = vmul.f32 %v112_v24, %v112_v24  ;;  %v466_v23 = vld [vmem:[%s3095_s4 + $0x30] sm:$0xff]  ;;  %v465_v24 = vld [vmem:[%s3095_s4 + $0x28] sm:$0xff] }
  0x99   :  { %v99_v30 = vsel %vm94_vm1, %v92_v26, 0.0  ;;  %330 = vmatpush.msrb.mxu0 %v92_v26  ;;  %1981 = vmatpush.msra.mxu1 %v92_v26 }
  0x9a   :  { %v118_v31 = vsel %vm94_vm1, %v114_v27, 0.0  ;;  %v119_v32 = vsel %vm94_vm1, %v116_v28, 0.0  ;;  %v100_v33 = vadd.f32 %v99_v30, %v98_v29  ;;  %489 = vmatpush.msrb.mxu2 %v466_v23  ;;  %v189_v27 = vld [vmem:[%s3094_s3 + $0x80] sm:$0xff]  ;;  %v462_v28 = vld [vmem:[%s3095_s4 + $0x10] sm:$0xff]  ;;  %v461_v29 = vld [vmem:[%s3095_s4 + $0x8] sm:$0xff] }
  0x9b   :  { %v120_v34 = vadd.f32 %v119_v32, %v118_v31  ;;  %331 = vmatpush.msrb.mxu0 %v89_v17  ;;  %1982 = vmatpush.msra.mxu1 %v89_v17  ;;  %v184_v17 = vld [vmem:[%s3094_s3 + $0x58] sm:$0xff]  ;;  %v460_v30 = vld [vmem:[%s3095_s4] sm:$0xff]  ;;  %v190_v31 = vld [vmem:[%s3094_s3 + $0x88] sm:$0xff] }
  0x9c   :  { %v109_v35 = vmul.f32 %v107_v19, %v100_v33  ;;  %490 = vmatpush.msrb.mxu2 %v465_v24  ;;  %v191_v32 = vld [vmem:[%s3094_s3 + $0x90] sm:$0xff]  ;;  %v573_v33 = vld [vmem:[%s3095_s4 + $0xb8] sm:$0xff] }
  0x9d   :  { %v124_v36 = vmul.f32 %v120_v34, %v107_v19  ;;  %332 = vmatpush.msrb.mxu0 %v86_v22  ;;  %1983 = vmatpush.msra.mxu1 %v86_v22  ;;  %v572_v34 = vld [vmem:[%s3095_s4 + $0xb0] sm:$0xff] }
  0x9e   :  { %v111_v39 = vsub.f32 %v86_v22, %v109_v35  ;;  %v113_v40 = vsub.f32 %v92_v26, %v109_v35  ;;  %v188_v22 = vld [vmem:[%s3094_s3 + $0x78] sm:$0xff]  ;;  %491 = vmatpush.msrb.mxu2 %v464_v25  ;;  %v571_v35 = vld [vmem:[%s3095_s4 + $0xa8] sm:$0xff]  ;;  %v199_v25 = vld [vmem:[%s3094_s3 + $0xd0] sm:$0xff] }
  0x9f   :  { %v126_v41 = vadd.f32 1e-08, %v124_v36  ;;  %333 = vmatpush.msrb.mxu0 %v83_v13  ;;  %1984 = vmatpush.msra.mxu1 %v83_v13  ;;  %v463_v26 = vld [vmem:[%s3095_s4 + $0x18] sm:$0xff]  ;;  %v570_v36 = vld [vmem:[%s3095_s4 + $0xa0] sm:$0xff] }
  0xa0   :  { %v115_v42 = vmul.f32 %v111_v39, %v111_v39  ;;  %v117_v43 = vmul.f32 %v113_v40, %v113_v40  ;;  %1876 = vmatmul.msk.f32.vlgmr.msrb.gmra.mxu0 %vm209_vm3, %v173_v37  ;;  %1881 = vmatmul.msk.f32.vlgmr.msra.gmra.mxu1 %vm209_vm3, %v178_v38  ;;  %v192_v37 = vld [vmem:[%s3094_s3 + $0x98] sm:$0xff]  ;;  %v519_v40 = vld [vmem:[%s3095_s4 + $0x70] sm:$0xff] }
  0xa1   :  { %1998 = vrsqrt.f32 %v126_v41  ;;  %vm135_vm4 = vcmp.eq.f32.partialorder %v126_v41, inf  ;;  %v138_v5 = vand.u32 2147483648, %v126_v41  ;;  %vm137_vm5 = vcmp.eq.f32.partialorder %v126_v41, 0.0  ;;  %492 = vmatpush.msrb.mxu2 %v463_v26  ;;  %594 = vmatpush.msra.mxu0 %v573_v33  ;;  %v520_v38 = vld [vmem:[%s3095_s4 + $0x78] sm:$0xff]  ;;  %v674_v33 = vld [vmem:[%s3095_s4 + $0x110] sm:$0xff] }
  0xa2   :  { %v121_v44 = vsel %vm94_vm1, %v115_v42, 0.0  ;;  %v122_v45 = vsel %vm94_vm1, %v117_v43, 0.0  ;;  %v569_v39 = vld [vmem:[%s3095_s4 + $0x98] sm:$0xff]  ;;  %541 = vmatpush.msra.mxu3 %v520_v38  ;;  %v518_v42 = vld [vmem:[%s3095_s4 + $0x68] sm:$0xff] }
  0xa3   :  { %v123_v46 = vadd.f32 %v122_v45, %v121_v44  ;;  %493 = vmatpush.msrb.mxu2 %v462_v28  ;;  %595 = vmatpush.msra.mxu0 %v572_v34  ;;  %v567_v43 = vld [vmem:[%s3095_s4 + $0x88] sm:$0xff]  ;;  %v517_v44 = vld [vmem:[%s3095_s4 + $0x60] sm:$0xff]  ;;  %v679_v26 = vld [vmem:[%s3095_s4 + $0x138] sm:$0xff] }
  0xa4   :  { %542 = vmatpush.msra.mxu3 %v519_v40  ;;  %v566_v45 = vld [vmem:[%s3095_s4 + $0x80] sm:$0xff]  ;;  %v677_v28 = vld [vmem:[%s3095_s4 + $0x128] sm:$0xff] }
  0xa5   :  { %v125_v47 = vmul.f32 %v123_v46, %v107_v19  ;;  %v186_v19 = vld [vmem:[%s3094_s3 + $0x68] sm:$0xff]  ;;  %494 = vmatpush.msrb.mxu2 %v461_v29  ;;  %596 = vmatpush.msra.mxu0 %v571_v35  ;;  %v193_v46 = vld [vmem:[%s3094_s3 + $0xa0] sm:$0xff] }
  0xa6   :  { %543 = vmatpush.msra.mxu3 %v518_v42  ;;  %v673_v34 = vld [vmem:[%s3095_s4 + $0x108] sm:$0xff]  ;;  %v732_v42 = vld [vmem:[%s3095_s4 + $0x178] sm:$0xff] }
  0xa7   :  { %v1999_v50 = vpop.eup %1998  ;;  %v127_v51 = vadd.f32 1e-08, %v125_v47  ;;  %495 = vmatpush.msrb.mxu2 %v460_v30  ;;  %597 = vmatpush.msra.mxu0 %v570_v36  ;;  %v516_v47 = vld [vmem:[%s3095_s4 + $0x58] sm:$0xff]  ;;  %v201_v36 = vld [vmem:[%s3094_s3 + $0xe0] sm:$0xff] }
  0xa8   :  { %1877 = vmatmul.msk.f32.gmra.mxu0 %vm209_vm3, %v174_v48  ;;  %1882 = vmatmul.msk.f32.gmra.mxu1 %vm209_vm3, %v179_v49  ;;  %v129_v52 = vmul.f32 %v1999_v50, %v126_v41  ;;  %v515_v48 = vld [vmem:[%s3095_s4 + $0x50] sm:$0xff]  ;;  %v514_v49 = vld [vmem:[%s3095_s4 + $0x48] sm:$0xff]  ;;  %v200_v30 = vld [vmem:[%s3094_s3 + $0xd8] sm:$0xff] }
  0xa9   :  { %2000 = vrsqrt.f32 %v127_v51  ;;  %vm147_vm6 = vcmp.eq.f32.partialorder %v127_v51, inf  ;;  %v150_v8 = vand.u32 2147483648, %v127_v51  ;;  %vm149_vm7 = vcmp.eq.f32.partialorder %v127_v51, 0.0  ;;  %598 = vmatpush.msra.mxu0 %v569_v39  ;;  %544 = vmatpush.msra.mxu3 %v517_v44  ;;  %v202_v39 = vld [vmem:[%s3094_s3 + $0xe8] sm:$0xff] }
  0xaa   :  { %v130_v53 = vmul.f32 %v1999_v50, %v129_v52  ;;  %v730_v44 = vld [vmem:[%s3095_s4 + $0x168] sm:$0xff] }
  0xab   :  { %545 = vmatpush.msra.mxu3 %v516_v47  ;;  %v729_v47 = vld [vmem:[%s3095_s4 + $0x160] sm:$0xff] }
  0xac   :  { %v131_v54 = vmul.f32 0.5, %v130_v53  ;;  %v194_v53 = vld [vmem:[%s3094_s3 + $0xa8] sm:$0xff] }
  0xad   :  { %546 = vmatpush.msra.mxu3 %v515_v48  ;;  %v728_v48 = vld [vmem:[%s3095_s4 + $0x158] sm:$0xff] }
  0xae   :  { %v132_v57 = vsub.f32 1.5, %v131_v54 }
  0xaf   :  { %v2001_v58 = vpop.eup %2000  ;;  %547 = vmatpush.msra.mxu3 %v514_v49  ;;  %v727_v49 = vld [vmem:[%s3095_s4 + $0x150] sm:$0xff] }
  0xb0   :  { %1878 = vmatmul.msk.f32.gmra.mxu0 %vm209_vm3, %v175_v55  ;;  %1883 = vmatmul.msk.f32.gmra.mxu1 %vm209_vm3, %v180_v56  ;;  %v133_v59 = vmul.f32 %v1999_v50, %v132_v57  ;;  %v141_v60 = vmul.f32 %v2001_v58, %v127_v51  ;;  %v513_v50 = vld [vmem:[%s3095_s4 + $0x40] sm:$0xff]  ;;  %v195_v56 = vld [vmem:[%s3094_s3 + $0xb0] sm:$0xff]  ;;  %v2005_v57 = vmov 1024.0  }
  0xb1   :  { %548 = vmatpush.msra.mxu3 %v513_v50  ;;  %2002 = vrcp.f32 %v2005_v57  ;;  %v726_v50 = vld [vmem:[%s3095_s4 + $0x148] sm:$0xff]  ;;  %v207_v57 = vld [vmem:[%s3094_s3 + $0x110] sm:$0xff] }
  0xb2   :  { %v142_v61 = vmul.f32 %v2001_v58, %v141_v60  ;;  %v134_v62 = vmul.f32 %v133_v59, %v126_v41  ;;  %v625_v59 = vld [vmem:[%s3095_s4 + $0xf0] sm:$0xff]  ;;  %v624_v60 = vld [vmem:[%s3095_s4 + $0xe8] sm:$0xff] }
  0xb3   :  { %700 = vmatpush.msrb.mxu3 %v679_v26 }
  0xb4   :  { %v143_v63 = vmul.f32 0.5, %v142_v61  ;;  %v136_v3 = vsel %vm135_vm4, %v126_v41, %v134_v62  ;;  %v568_v41 = vld [vmem:[%s3095_s4 + $0x90] sm:$0xff] }
  0xb5   :  { %v139_v7 = vsel %vm137_vm5, %v138_v5, %v136_v3  ;;  %599 = vmatpush.msra.mxu0 %v568_v41  ;;  %v620_v5 = vld [vmem:[%s3095_s4 + $0xc8] sm:$0xff]  ;;  %v203_v41 = vld [vmem:[%s3094_s3 + $0xf0] sm:$0xff] }
  0xb6   :  { %v144_v2 = vsub.f32 1.5, %v143_v63  ;;  %v152_v13 = vsel %vm94_vm1, %v139_v7, 0.0 }
  0xb7   :  { %600 = vmatpush.msra.mxu0 %v567_v43  ;;  %v2003_v61 = vpop.eup %2002  ;;  %v731_v43 = vld [vmem:[%s3095_s4 + $0x170] sm:$0xff] }
  0xb8   :  { %1879 = vmatmul.msk.f32.gmra.mxu0 %vm209_vm3, %v176_v0  ;;  %1884 = vmatmul.msk.f32.gmra.mxu1 %vm209_vm3, %v181_v1  ;;  %v145_v4 = vmul.f32 %v2001_v58, %v144_v2  ;;  %v626_v58 = vld [vmem:[%s3095_s4 + $0xf8] sm:$0xff]  ;;  %v623_v1 = vld [vmem:[%s3095_s4 + $0xe0] sm:$0xff]  ;;  %v165_v3 = vmul.f32 1024.0, %v2003_v61  ;;  %vm169_vm8 = vweird.f32 %v2003_v61 }
  0xb9   :  { %601 = vmatpush.msra.mxu0 %v566_v45  ;;  %647 = vmatpush.msra.mxu2 %v626_v58  ;;  %v196_v0 = vld [vmem:[%s3094_s3 + $0xb8] sm:$0xff] }
  0xba   :  { %v146_v6 = vmul.f32 %v145_v4, %v127_v51  ;;  %v622_v2 = vld [vmem:[%s3095_s4 + $0xd8] sm:$0xff]  ;;  %v621_v4 = vld [vmem:[%s3095_s4 + $0xd0] sm:$0xff] }
  0xbb   :  { %648 = vmatpush.msra.mxu2 %v625_v59  ;;  %753 = vmatpush.msrb.mxu0 %v732_v42  ;;  %v785_v58 = vld [vmem:[%s3095_s4 + $0x1b8] sm:$0xff]  ;;  %v784_v59 = vld [vmem:[%s3095_s4 + $0x1b0] sm:$0xff]  ;;  %v888_v42 = vld [vmem:[%s3095_s4 + $0x220] sm:$0xff] }
  0xbc   :  { %v148_v9 = vsel %vm147_vm6, %v127_v51, %v146_v6  ;;  %v166_v6 = vsub.f32 1.0, %v165_v3 }
  0xbd   :  { %v151_v12 = vsel %vm149_vm7, %v150_v8, %v148_v9  ;;  %649 = vmatpush.msra.mxu2 %v624_v60  ;;  %754 = vmatpush.msrb.mxu0 %v731_v43  ;;  %v783_v60 = vld [vmem:[%s3095_s4 + $0x1a8] sm:$0xff]  ;;  %v887_v43 = vld [vmem:[%s3095_s4 + $0x218] sm:$0xff] }
  0xbe   :  { %v153_v14 = vsel %vm94_vm1, %v151_v12, 0.0  ;;  %v619_v12 = vld [vmem:[%s3095_s4 + $0xc0] sm:$0xff] }
  0xbf   :  { %v154_v15 = vadd.f32 %v153_v14, %v152_v13  ;;  %650 = vmatpush.msra.mxu2 %v623_v1  ;;  %v167_v14 = vmul.f32 %v2003_v61, %v166_v6  ;;  %755 = vmatpush.msrb.mxu0 %v730_v44  ;;  %v780_v1 = vld [vmem:[%s3095_s4 + $0x190] sm:$0xff] }
  0xc0   :  { %1880 = vmatmul.msk.f32.gmra.mxu0 %vm209_vm3, %v177_v10  ;;  %1885 = vmatmul.msk.f32.gmra.mxu1 %vm209_vm3, %v182_v11  ;;  %v197_v11 = vld [vmem:[%s3094_s3 + $0xc0] sm:$0xff]  ;;  %v886_v44 = vld [vmem:[%s3095_s4 + $0x210] sm:$0xff] }
  0xc1   :  { %155 = vadd.xlane.f32.xlu0 %v154_v15  ;;  %651 = vmatpush.msra.mxu2 %v622_v2  ;;  %v779_v2 = vld [vmem:[%s3095_s4 + $0x188] sm:$0xff] }
  0xc2   :  { %756 = vmatpush.msrb.mxu0 %v729_v47  ;;  %v884_v47 = vld [vmem:[%s3095_s4 + $0x200] sm:$0xff] }
  0xc3   :  { %652 = vmatpush.msra.mxu2 %v621_v4  ;;  %v778_v4 = vld [vmem:[%s3095_s4 + $0x180] sm:$0xff] }
  0xc4   :  { %757 = vmatpush.msrb.mxu0 %v728_v48 }
  0xc5   :  { %653 = vmatpush.msra.mxu2 %v620_v5 }
  0xc6   :  { %758 = vmatpush.msrb.mxu0 %v727_v49 }
  0xc7   :  { %654 = vmatpush.msra.mxu2 %v619_v12  ;;  %v834_v12 = vld [vmem:[%s3095_s4 + $0x1d8] sm:$0xff] }
  0xc8   :  { %1886 = vmatmul.msk.f32.gmra.mxu1 %vm209_vm3, %v183_v16  ;;  %759 = vmatpush.msrb.mxu0 %v726_v50 }
  0xd0   :  { %1887 = vmatmul.msk.f32.gmra.mxu1 %vm209_vm3, %v184_v17  ;;  %v168_v17 = vadd.f32 %v2003_v61, %v167_v14  ;;  %v832_v14 = vld [vmem:[%s3095_s4 + $0x1c8] sm:$0xff] }
  0xd2   :  { %v170_v23 = vsel %vm169_vm8, %v2003_v61, %v168_v17 }
  0xd8   :  { %1888 = vmatmul.msk.f32.gmra.mxu1 %vm209_vm3, %v185_v18 }
  0xe0   :  { %1889 = vmatmul.msk.f32.gmra.mxu1 %vm209_vm3, %v186_v19 }
  0xe8   :  { %1890 = vmatmul.msk.f32.gmra.mxu1 %vm209_vm3, %v187_v20  ;;  %v198_v20 = vld [vmem:[%s3094_s3 + $0xc8] sm:$0xff] }
  0xf0   :  { %1891 = vmatmul.msk.f32.gmra.mxu1 %vm209_vm3, %v188_v22 }
  0xf8   :  { %1892 = vmatmul.msk.f32.gmra.mxu1 %vm209_vm3, %v189_v27  ;;  %v678_v27 = vld [vmem:[%s3095_s4 + $0x130] sm:$0xff] }
  0xf9   :  { %701 = vmatpush.msrb.mxu3 %v678_v27 }
  0xfb   :  { %702 = vmatpush.msrb.mxu3 %v677_v28 }
 0x100   :  { %1893 = vmatmul.msk.f32.gmra.mxu1 %vm209_vm3, %v190_v31  ;;  %v676_v31 = vld [vmem:[%s3095_s4 + $0x120] sm:$0xff] }
 0x101   :  { %703 = vmatpush.msrb.mxu3 %v676_v31 }
 0x108   :  { %1894 = vmatmul.msk.f32.gmra.mxu1 %vm209_vm3, %v191_v32  ;;  %v675_v32 = vld [vmem:[%s3095_s4 + $0x118] sm:$0xff] }
 0x109   :  { %704 = vmatpush.msrb.mxu3 %v675_v32 }
 0x10b   :  { %705 = vmatpush.msrb.mxu3 %v674_v33  ;;  %v891_v33 = vld [vmem:[%s3095_s4 + $0x238] sm:$0xff] }
 0x10d   :  { %706 = vmatpush.msrb.mxu3 %v673_v34 }
 0x110   :  { %1895 = vmatmul.msk.f32.gmra.mxu1 %vm209_vm3, %v192_v37  ;;  %v672_v37 = vld [vmem:[%s3095_s4 + $0x100] sm:$0xff] }
 0x111   :  { %707 = vmatpush.msrb.mxu3 %v672_v37 }
 0x118   :  { %1896 = vmatmul.msk.f32.gmra.mxu1 %vm209_vm3, %v193_v46  ;;  %v204_v46 = vld [vmem:[%s3094_s3 + $0xf8] sm:$0xff] }
 0x11d   :  { %v335_v51 = vpop.f32.mrf.mxu0  ;;  %v2255_v52 = vpop.f32.mrf.mxu1 }
 0x11e   :  { %1912 = vmatmul.msk.f32.vlgmr.msrb.gmra.mxu2 %vm94_vm1, %v335_v51 }
 0x11f   :  { %806 = vmatpush.msrb.mxu2 %v785_v58 }
 0x120   :  { %1897 = vmatmul.msk.f32.gmra.mxu1 %vm209_vm3, %v194_v53  ;;  %v725_v53 = vld [vmem:[%s3095_s4 + $0x140] sm:$0xff] }
 0x121   :  { %760 = vmatpush.msrb.mxu0 %v725_v53  ;;  %807 = vmatpush.msrb.mxu2 %v784_v59 }
 0x123   :  { %808 = vmatpush.msrb.mxu2 %v783_v60 }
 0x125   :  { %v338_v54 = vpop.f32.mrf.mxu0  ;;  %v2262_v55 = vpop.f32.mrf.mxu1 }
 0x126   :  { %1913 = vmatmul.msk.f32.gmra.mxu2 %vm94_vm1, %v338_v54 }
 0x128   :  { %1898 = vmatmul.msk.f32.gmra.mxu1 %vm209_vm3, %v195_v56 }
 0x12d   :  { %v341_v62 = vpop.f32.mrf.mxu0  ;;  %v2278_v63 = vpop.f32.mrf.mxu1 }
 0x12e   :  { %1914 = vmatmul.msk.f32.gmra.mxu2 %vm94_vm1, %v341_v62  ;;  %v208_v62 = vld [vmem:[%s3094_s3 + $0x118] sm:$0xff] }
 0x130   :  { %1899 = vmatmul.msk.f32.gmra.mxu1 %vm209_vm3, %v196_v0  ;;  %v781_v0 = vld [vmem:[%s3095_s4 + $0x198] sm:$0xff] }
 0x134   :  { %v156_v7 = vpop.xlane.xlu0 %155 }
 0x135   :  { %v157_v8 = vrot.slane %v156_v7, 4  ;;  %v344_v9 = vpop.f32.mrf.mxu0  ;;  %v359_v10 = vpop.f32.mrf.mxu1 }
 0x136   :  { %1915 = vmatmul.msk.f32.gmra.mxu2 %vm94_vm1, %v344_v9  ;;  %1920 = vmatmul.msk.f32.vlgmr.msra.gmra.mxu0 %vm94_vm1, %v359_v10  ;;  %v836_v9 = vld [vmem:[%s3095_s4 + $0x1e8] sm:$0xff] }
 0x137   :  { %v158_v13 = vadd.f32 %v157_v8, %v156_v7  ;;  %v838_v7 = vld [vmem:[%s3095_s4 + $0x1f8] sm:$0xff]  ;;  %v837_v8 = vld [vmem:[%s3095_s4 + $0x1f0] sm:$0xff]  ;;  %912 = vmatpush.msra.mxu0 %v891_v33 }
 0x138   :  { %1900 = vmatmul.msk.f32.gmra.mxu1 %vm209_vm3, %v197_v11  ;;  %v835_v11 = vld [vmem:[%s3095_s4 + $0x1e0] sm:$0xff] }
 0x139   :  { %v159_v15 = vrot.slane %v158_v13, 2 }
 0x13b   :  { %v160_v16 = vadd.f32 %v159_v15, %v158_v13  ;;  %v833_v13 = vld [vmem:[%s3095_s4 + $0x1d0] sm:$0xff] }
 0x13d   :  { %v347_v18 = vpop.f32.mrf.mxu0  ;;  %v362_v19 = vpop.f32.mrf.mxu1  ;;  %v161_v21 = vrot.slane %v160_v16, 1 }
 0x13e   :  { %1916 = vmatmul.msk.f32.vlgmr.msra.gmra.mxu3 %vm94_vm1, %v347_v18  ;;  %1921 = vmatmul.msk.f32.gmra.mxu0 %vm94_vm1, %v362_v19  ;;  %v444_v18 = vld [vmem:[%s3097_s5] sm:$0xff] }
 0x13f   :  { %v162_v22 = vadd.f32 %v161_v21, %v160_v16  ;;  %859 = vmatpush.msra.mxu3 %v838_v7  ;;  %v831_v16 = vld [vmem:[%s3095_s4 + $0x1c0] sm:$0xff] }
 0x140   :  { %1901 = vmatmul.msk.f32.gmra.mxu1 %vm209_vm3, %v198_v20  ;;  %v2478_v20 = vld [vmem:[%s3096_s6] ss:$0 sm:$0xff] }
 0x141   :  { %1985 = vpush %v162_v22  ;;  %860 = vmatpush.msra.mxu3 %v837_v8 }
 0x142   :  { %1987 = vpush %v170_v23 }
 0x143   :  { %861 = vmatpush.msra.mxu3 %v836_v9  ;;  %v1095_v9 = vld [vmem:[%s3098_s8 + $0xb0] sm:$0xff] }
 0x145   :  { %v365_v24 = vpop.f32.mrf.mxu1  ;;  %862 = vmatpush.msra.mxu3 %v835_v11 }
 0x146   :  { %1917 = vmatmul.msk.f32.gmra.mxu3 %vm94_vm1, %v2255_v52  ;;  %1922 = vmatmul.msk.f32.gmra.mxu0 %vm94_vm1, %v365_v24  ;;  %v205_v52 = vld [vmem:[%s3094_s3 + $0x100] sm:$0xff]  ;;  %v445_v24 = vld [vmem:[%s3097_s5 + $0x8] sm:$0xff] }
 0x147   :  { %863 = vmatpush.msra.mxu3 %v834_v12  ;;  %v1093_v12 = vld [vmem:[%s3098_s8 + $0xa0] sm:$0xff] }
 0x148   :  { %1902 = vmatmul.msk.f32.gmra.mxu1 %vm209_vm3, %v199_v25 }
 0x149   :  { %864 = vmatpush.msra.mxu3 %v833_v13  ;;  %v1092_v13 = vld [vmem:[%s3098_s8 + $0x98] sm:$0xff] }
 0x14b   :  { %865 = vmatpush.msra.mxu3 %v832_v14 }
 0x14d   :  { %v368_v29 = vpop.f32.mrf.mxu1  ;;  %866 = vmatpush.msra.mxu3 %v831_v16  ;;  %v1091_v16 = vld [vmem:[%s3098_s8 + $0x90] sm:$0xff] }
 0x14e   :  { %1918 = vmatmul.msk.f32.gmra.mxu3 %vm94_vm1, %v2262_v55  ;;  %1923 = vmatmul.msk.f32.gmra.mxu0 %vm94_vm1, %v368_v29  ;;  %v206_v55 = vld [vmem:[%s3094_s3 + $0x108] sm:$0xff] }
 0x150   :  { %1903 = vmatmul.msk.f32.gmra.mxu1 %vm209_vm3, %v200_v30 }
 0x155   :  { %v371_v35 = vpop.f32.mrf.mxu1 }
 0x156   :  { %1919 = vmatmul.msk.f32.gmra.mxu3 %vm94_vm1, %v2278_v63  ;;  %1924 = vmatmul.msk.f32.vlgmr.msra.gmra.mxu2 %vm94_vm1, %v371_v35  ;;  %v782_v63 = vld [vmem:[%s3095_s4 + $0x1a0] sm:$0xff] }
 0x157   :  { %809 = vmatpush.msrb.mxu2 %v782_v63 }
 0x158   :  { %1904 = vmatmul.msk.f32.gmra.mxu1 %vm209_vm3, %v201_v36  ;;  %v890_v36 = vld [vmem:[%s3095_s4 + $0x230] sm:$0xff] }
 0x159   :  { %810 = vmatpush.msrb.mxu2 %v781_v0  ;;  %913 = vmatpush.msra.mxu0 %v890_v36 }
 0x15b   :  { %811 = vmatpush.msrb.mxu2 %v780_v1 }
 0x15d   :  { %v374_v38 = vpop.f32.mrf.mxu1  ;;  %812 = vmatpush.msrb.mxu2 %v779_v2 }
 0x15e   :  { %1925 = vmatmul.msk.f32.gmra.mxu2 %vm94_vm1, %v374_v38  ;;  %v889_v38 = vld [vmem:[%s3095_s4 + $0x228] sm:$0xff] }
 0x15f   :  { %813 = vmatpush.msrb.mxu2 %v778_v4  ;;  %914 = vmatpush.msra.mxu0 %v889_v38 }
 0x160   :  { %1905 = vmatmul.msk.f32.gmra.mxu1 %vm209_vm3, %v202_v39 }
 0x161   :  { %915 = vmatpush.msra.mxu0 %v888_v42 }
 0x163   :  { %916 = vmatpush.msra.mxu0 %v887_v43 }
 0x165   :  { %v377_v40 = vpop.f32.mrf.mxu1  ;;  %917 = vmatpush.msra.mxu0 %v886_v44 }
 0x166   :  { %1926 = vmatmul.msk.f32.gmra.mxu2 %vm94_vm1, %v377_v40 }
 0x168   :  { %1906 = vmatmul.msk.f32.gmra.mxu1 %vm209_vm3, %v203_v41 }
 0x16d   :  { %v380_v45 = vpop.f32.mrf.mxu1 }
 0x16e   :  { %1927 = vmatmul.msk.f32.gmra.mxu2 %vm94_vm1, %v380_v45  ;;  %v885_v45 = vld [vmem:[%s3095_s4 + $0x208] sm:$0xff] }
 0x16f   :  { %918 = vmatpush.msra.mxu0 %v885_v45 }
 0x170   :  { %1907 = vmatmul.msk.f32.gmra.mxu1 %vm209_vm3, %v204_v46 }
 0x171   :  { %919 = vmatpush.msra.mxu0 %v884_v47 }
 0x172   :  { %s1986_s14 = spop %1985 }
 0x173   :  { %s1988_s17 = spop %1987 }
 0x174   :  { %s172_s22 = smul.f32 %s1988_s17, %s1986_s14 }
 0x175   :  { %v383_v51 = vpop.f32.mrf.mxu1 }
 0x176   :  { %1928 = vmatmul.msk.f32.vlgmr.msrb.gmra.mxu3 %vm94_vm1, %v383_v51  ;;  %v2469_v17 = vstv %s172_s22 }
 0x177   :  { %v449_v19 = vmul.f32 %v2469_v17, %v444_v18  ;;  %v450_v28 = vmul.f32 %v2469_v17, %v445_v24  ;;  %v1090_v18 = vld [vmem:[%s3098_s8 + $0x88] sm:$0xff] }
 0x178   :  { %1908 = vmatmul.msk.f32.gmra.mxu1 %vm209_vm3, %v205_v52 }
 0x179   :  { %v456_v23 = vadd.f32 %v2478_v20, %v449_v19  ;;  %v457_v32 = vadd.f32 %v2478_v20, %v450_v28  ;;  %v446_v19 = vld [vmem:[%s3097_s5 + $0x10] sm:$0xff] }
 0x17a   :  { %v451_v24 = vmul.f32 %v2469_v17, %v446_v19  ;;  %v1009_v19 = vld [vmem:[%s3099_s7 + $0x2] sm:$0x3] }
 0x17d   :  { %v386_v54 = vpop.f32.mrf.mxu1 }
 0x17e   :  { %1929 = vmatmul.msk.f32.gmra.mxu3 %vm94_vm1, %v386_v54 }
 0x180   :  { %1909 = vmatmul.msk.f32.gmra.mxu1 %vm209_vm3, %v206_v55 }
 0x185   :  { %v389_v56 = vpop.f32.mrf.mxu1 }
 0x186   :  { %1930 = vmatmul.msk.f32.gmra.mxu3 %vm94_vm1, %v389_v56 }
 0x188   :  { %1910 = vmatmul.msk.f32.gmra.mxu1 %vm209_vm3, %v207_v57 }
 0x18d   :  { %v392_v61 = vpop.f32.mrf.mxu1 }
 0x18e   :  { %1931 = vmatmul.msk.f32.gmra.mxu3 %vm94_vm1, %v392_v61 }
 0x190   :  { %1911 = vmatmul.msk.f32.gmra.mxu1 %vm209_vm3, %v208_v62 }
 0x195   :  { %v395_v3 = vpop.f32.mrf.mxu1 }
 0x196   :  { %1932 = vmatmul.msk.f32.vlgmr.msrb.gmra.mxu0 %vm94_vm1, %v395_v3 }
 0x19d   :  { %v398_v5 = vpop.f32.mrf.mxu1 }
 0x19e   :  { %1933 = vmatmul.msk.f32.gmra.mxu0 %vm94_vm1, %v398_v5 }
 0x1a1   :  { %v497_v21 = vpop.f32.mrf.mxu2 }
 0x1a2   :  { %v509_v25 = vadd.f32 %v497_v21, %v456_v23  ;;  %v1089_v21 = vld [vmem:[%s3098_s8 + $0x80] sm:$0xff] }
 0x1a5   :  { %v401_v6 = vpop.f32.mrf.mxu1 }
 0x1a6   :  { %1934 = vmatmul.msk.f32.gmra.mxu0 %vm94_vm1, %v401_v6  ;;  %v1096_v6 = vld [vmem:[%s3098_s8 + $0xb8] sm:$0xff] }
 0x1a7   :  { %1108 = vmatpush.msrb.mxu0 %v1096_v6 }
 0x1a9   :  { %v500_v30 = vpop.f32.mrf.mxu2  ;;  %1109 = vmatpush.msrb.mxu0 %v1095_v9 }
 0x1aa   :  { %v510_v34 = vadd.f32 %v500_v30, %v457_v32  ;;  %v458_v30 = vadd.f32 %v2478_v20, %v451_v24  ;;  %v1040_v24 = vld [vmem:[%s3098_s8 + $0x78] sm:$0xff] }
 0x1ad   :  { %v404_v10 = vpop.f32.mrf.mxu1 }
 0x1ae   :  { %1935 = vmatmul.msk.f32.gmra.mxu0 %vm94_vm1, %v404_v10  ;;  %v1094_v10 = vld [vmem:[%s3098_s8 + $0xa8] sm:$0xff] }
 0x1af   :  { %1110 = vmatpush.msrb.mxu0 %v1094_v10  ;;  %v982_v10 = vld [vmem:[%s3098_s8 + $0x28] sm:$0xff] }
 0x1b1   :  { %v503_v55 = vpop.f32.mrf.mxu2  ;;  %1111 = vmatpush.msrb.mxu0 %v1093_v12  ;;  %v953_v12 = vld [vmem:[%s3099_s7] sm:$0x3] }
 0x1b3   :  { %v2485_v26 = vpop.f32.mrf.mxu0  ;;  %1112 = vmatpush.msrb.mxu0 %v1092_v13  ;;  %v981_v13 = vld [vmem:[%s3098_s8 + $0x20] sm:$0xff] }
 0x1b5   :  { %v407_v15 = vpop.f32.mrf.mxu1  ;;  %1113 = vmatpush.msrb.mxu0 %v1091_v16  ;;  %v979_v16 = vld [vmem:[%s3098_s8 + $0x10] sm:$0xff] }
 0x1b6   :  { %1936 = vmatmul.msk.f32.vlgmr.msrb.gmra.mxu2 %vm94_vm1, %v407_v15 }
 0x1b7   :  { %1114 = vmatpush.msrb.mxu0 %v1090_v18  ;;  %v978_v18 = vld [vmem:[%s3098_s8 + $0x8] sm:$0xff] }
 0x1b9   :  { %v506_v57 = vpop.f32.mrf.mxu2  ;;  %1115 = vmatpush.msrb.mxu0 %v1089_v21  ;;  %v1065_v21 = vld [vmem:[%s3099_s7 + $0x4] sm:$0x3] }
 0x1bb   :  { %v606_v39 = vpop.f32.mrf.mxu0 }
 0x1bd   :  { %v410_v22 = vpop.f32.mrf.mxu1 }
 0x1be   :  { %1937 = vmatmul.msk.f32.gmra.mxu2 %vm94_vm1, %v410_v22  ;;  %v447_v22 = vld [vmem:[%s3097_s5 + $0x18] sm:$0xff] }
 0x1bf   :  { %v452_v28 = vmul.f32 %v2469_v17, %v447_v22  ;;  %v1121_v22 = vld [vmem:[%s3099_s7 + $0x6] sm:$0x3] }
 0x1c1   :  { %v550_v27 = vpop.f32.mrf.mxu3  ;;  %v459_v32 = vadd.f32 %v2478_v20, %v452_v28  ;;  %v1037_v28 = vld [vmem:[%s3098_s8 + $0x60] sm:$0xff] }
 0x1c2   :  { %v2488_v29 = vadd.f32 %v550_v27, %v509_v25 }
 0x1c3   :  { %v609_v58 = vpop.f32.mrf.mxu0  ;;  %v512_v33 = vadd.f32 %v506_v57, %v459_v32  ;;  %v1034_v32 = vld [vmem:[%s3098_s8 + $0x48] sm:$0xff] }
 0x1c4   :  { %v615_v43 = vadd.f32 %v2485_v26, %v2488_v29 }
 0x1c5   :  { %v413_v31 = vpop.f32.mrf.mxu1 }
 0x1c6   :  { %1938 = vmatmul.msk.f32.gmra.mxu2 %vm94_vm1, %v413_v31  ;;  %v511_v31 = vadd.f32 %v503_v55, %v458_v30  ;;  %v1036_v30 = vld [vmem:[%s3098_s8 + $0x58] sm:$0xff] }
 0x1c9   :  { %v553_v35 = vpop.f32.mrf.mxu3 }
 0x1ca   :  { %v563_v37 = vadd.f32 %v553_v35, %v510_v34 }
 0x1cb   :  { %v612_v62 = vpop.f32.mrf.mxu0 }
 0x1cc   :  { %v2501_v40 = vadd.f32 %v606_v39, %v563_v37 }
 0x1cd   :  { %v416_v41 = vpop.f32.mrf.mxu1 }
 0x1ce   :  { %1939 = vmatmul.msk.f32.gmra.mxu2 %vm94_vm1, %v416_v41 }
 0x1d1   :  { %v556_v56 = vpop.f32.mrf.mxu3 }
 0x1d2   :  { %v564_v34 = vadd.f32 %v556_v56, %v511_v31  ;;  %v1035_v31 = vld [vmem:[%s3098_s8 + $0x50] sm:$0xff] }
 0x1d4   :  { %v617_v39 = vadd.f32 %v609_v58, %v564_v34  ;;  %v1152_v34 = vld [vmem:[%s3098_s8 + $0xf8] sm:$0xff] }
 0x1d5   :  { %v419_v46 = vpop.f32.mrf.mxu1 }
 0x1d6   :  { %1940 = vmatmul.msk.f32.vlgmr.msra.gmra.mxu3 %vm94_vm1, %v419_v46 }
 0x1d9   :  { %v559_v59 = vpop.f32.mrf.mxu3  ;;  %v656_v60 = vpop.f32.mrf.mxu2 }
 0x1da   :  { %v565_v37 = vadd.f32 %v559_v59, %v512_v33  ;;  %v668_v47 = vadd.f32 %v656_v60, %v615_v43  ;;  %v1033_v33 = vld [vmem:[%s3098_s8 + $0x40] sm:$0xff]  ;;  %v1146_v43 = vld [vmem:[%s3098_s8 + $0xc8] sm:$0xff] }
 0x1dc   :  { %v618_v42 = vadd.f32 %v612_v62, %v565_v37  ;;  %v1150_v37 = vld [vmem:[%s3098_s8 + $0xe8] sm:$0xff] }
 0x1dd   :  { %v422_v48 = vpop.f32.mrf.mxu1 }
 0x1de   :  { %1941 = vmatmul.msk.f32.gmra.mxu3 %vm94_vm1, %v422_v48 }
 0x1e1   :  { %v659_v63 = vpop.f32.mrf.mxu2 }
 0x1e2   :  { %v669_v44 = vadd.f32 %v659_v63, %v2501_v40 }
 0x1e5   :  { %v425_v49 = vpop.f32.mrf.mxu1 }
 0x1e6   :  { %1942 = vmatmul.msk.f32.gmra.mxu3 %vm94_vm1, %v425_v49 }
 0x1e9   :  { %v662_v2 = vpop.f32.mrf.mxu2 }
 0x1ea   :  { %v670_v41 = vadd.f32 %v662_v2, %v617_v39  ;;  %v1148_v39 = vld [vmem:[%s3098_s8 + $0xd8] sm:$0xff] }
 0x1ed   :  { %v428_v50 = vpop.f32.mrf.mxu1 }
 0x1ee   :  { %1943 = vmatmul.msk.f32.gmra.mxu3 %vm94_vm1, %v428_v50 }
 0x1f1   :  { %v665_v5 = vpop.f32.mrf.mxu2 }
 0x1f2   :  { %v671_v17 = vadd.f32 %v665_v5, %v618_v42  ;;  %v1147_v42 = vld [vmem:[%s3098_s8 + $0xd0] sm:$0xff] }
 0x1f5   :  { %v431_v51 = vpop.f32.mrf.mxu1 }
 0x1f6   :  { %1944 = vmatmul.msk.f32.vlgmr.msra.gmra.mxu0 %vm94_vm1, %v431_v51 }
 0x1f9   :  { %v709_v61 = vpop.f32.mrf.mxu3 }
 0x1fa   :  { %v721_v51 = vadd.f32 %v709_v61, %v668_v47  ;;  %v1233_v47 = vld [vmem:[%s3099_s7 + $0xa] sm:$0x3] }
 0x1fd   :  { %v434_v52 = vpop.f32.mrf.mxu1 }
 0x1fe   :  { %1945 = vmatmul.msk.f32.gmra.mxu0 %vm94_vm1, %v434_v52 }
 0x201   :  { %v712_v0 = vpop.f32.mrf.mxu3 }
 0x202   :  { %v722_v48 = vadd.f32 %v712_v0, %v669_v44  ;;  %v1145_v44 = vld [vmem:[%s3098_s8 + $0xc0] sm:$0xff] }
 0x205   :  { %v437_v53 = vpop.f32.mrf.mxu1 }
 0x206   :  { %1946 = vmatmul.msk.f32.gmra.mxu0 %vm94_vm1, %v437_v53 }
 0x209   :  { %v715_v3 = vpop.f32.mrf.mxu3 }
 0x20a   :  { %v723_v45 = vadd.f32 %v715_v3, %v670_v41 }
 0x20d   :  { %v440_v54 = vpop.f32.mrf.mxu1 }
 0x20e   :  { %1947 = vmatmul.msk.f32.gmra.mxu0 %vm94_vm1, %v440_v54 }
 0x211   :  { %v718_v7 = vpop.f32.mrf.mxu3 }
 0x212   :  { %v724_v20 = vadd.f32 %v718_v7, %v671_v17  ;;  %v983_v7 = vld [vmem:[%s3098_s8 + $0x30] sm:$0xff] }
 0x213   :  { %v762_v1 = vpop.f32.mrf.mxu0 }
 0x214   :  { %v774_v56 = vadd.f32 %v762_v1, %v721_v51  ;;  %v984_v1 = vld [vmem:[%s3098_s8 + $0x38] sm:$0xff]  ;;  %v1513_v51 = vld [vmem:[%s3099_s7 + $0x14] sm:$0x3] }
 0x215   :  { %996 = vmatpush.msrb.mxu3 %v984_v1  ;;  %v1318_v1 = vld [vmem:[%s3098_s8 + $0x1a8] sm:$0xff] }
 0x217   :  { %997 = vmatpush.msrb.mxu3 %v983_v7  ;;  %v1258_v7 = vld [vmem:[%s3098_s8 + $0x148] sm:$0xff] }
 0x219   :  { %998 = vmatpush.msrb.mxu3 %v982_v10  ;;  %v1316_v10 = vld [vmem:[%s3098_s8 + $0x198] sm:$0xff] }
 0x21b   :  { %v765_v4 = vpop.f32.mrf.mxu0  ;;  %999 = vmatpush.msrb.mxu3 %v981_v13  ;;  %v1375_v13 = vld [vmem:[%s3098_s8 + $0x1f0] sm:$0xff] }
 0x21c   :  { %v775_v52 = vadd.f32 %v765_v4, %v722_v48  ;;  %v1289_v48 = vld [vmem:[%s3099_s7 + $0xc] sm:$0x3] }
 0x223   :  { %v768_v8 = vpop.f32.mrf.mxu0 }
 0x224   :  { %v776_v49 = vadd.f32 %v768_v8, %v723_v45  ;;  %v1177_v45 = vld [vmem:[%s3099_s7 + $0x8] sm:$0x3] }
 0x22b   :  { %v771_v15 = vpop.f32.mrf.mxu0 }
 0x22c   :  { %v777_v53 = vadd.f32 %v771_v15, %v724_v20  ;;  %v980_v15 = vld [vmem:[%s3098_s8 + $0x18] sm:$0xff]  ;;  %v1345_v20 = vld [vmem:[%s3099_s7 + $0xe] sm:$0x3] }
 0x22d   :  { %1000 = vmatpush.msrb.mxu3 %v980_v15  ;;  %v1314_v15 = vld [vmem:[%s3098_s8 + $0x188] sm:$0xff] }
 0x22f   :  { %1001 = vmatpush.msrb.mxu3 %v979_v16  ;;  %v1313_v16 = vld [vmem:[%s3098_s8 + $0x180] sm:$0xff] }
 0x231   :  { %1002 = vmatpush.msrb.mxu3 %v978_v18  ;;  %v1373_v18 = vld [vmem:[%s3098_s8 + $0x1e0] sm:$0xff] }
 0x239   :  { %v815_v11 = vpop.f32.mrf.mxu2 }
 0x23a   :  { %v827_v26 = vadd.f32 %v815_v11, %v774_v56  ;;  %v1625_v56 = vld [vmem:[%s3099_s7 + $0x18] sm:$0x3] }
 0x241   :  { %v818_v23 = vpop.f32.mrf.mxu2 }
 0x242   :  { %v828_v57 = vadd.f32 %v818_v23, %v775_v52  ;;  %v977_v23 = vld [vmem:[%s3098_s8] sm:$0xff]  ;;  %v1569_v52 = vld [vmem:[%s3099_s7 + $0x16] sm:$0x3] }
 0x243   :  { %1003 = vmatpush.msrb.mxu3 %v977_v23 }
 0x245   :  { %1052 = vmatpush.msra.mxu3 %v1040_v24  ;;  %v1369_v24 = vld [vmem:[%s3098_s8 + $0x1c0] sm:$0xff] }
 0x249   :  { %v821_v35 = vpop.f32.mrf.mxu2 }
 0x24a   :  { %v829_v54 = vadd.f32 %v821_v35, %v776_v49  ;;  %v1401_v49 = vld [vmem:[%s3099_s7 + $0x10] sm:$0x3] }
 0x251   :  { %v824_v50 = vpop.f32.mrf.mxu2 }
 0x252   :  { %v830_v58 = vadd.f32 %v824_v50, %v777_v53  ;;  %v1457_v50 = vld [vmem:[%s3099_s7 + $0x12] sm:$0x3]  ;;  %v1208_v53 = vld [vmem:[%s3098_s8 + $0x138] sm:$0xff] }
 0x259   :  { %v868_v14 = vpop.f32.mrf.mxu3 }
 0x25a   :  { %v880_v2 = vadd.f32 %v868_v14, %v827_v26  ;;  %v1205_v26 = vld [vmem:[%s3098_s8 + $0x120] sm:$0xff] }
 0x261   :  { %v871_v25 = vpop.f32.mrf.mxu3 }
 0x262   :  { %v881_v29 = vadd.f32 %v871_v25, %v828_v57  ;;  %v1039_v25 = vld [vmem:[%s3098_s8 + $0x70] sm:$0xff]  ;;  %v1681_v57 = vld [vmem:[%s3099_s7 + $0x1a] sm:$0x3] }
 0x263   :  { %1053 = vmatpush.msra.mxu3 %v1039_v25  ;;  %v1432_v25 = vld [vmem:[%s3098_s8 + $0x238] sm:$0xff] }
 0x269   :  { %v874_v38 = vpop.f32.mrf.mxu3 }
 0x26a   :  { %v882_v59 = vadd.f32 %v874_v38, %v829_v54  ;;  %v1149_v38 = vld [vmem:[%s3098_s8 + $0xe0] sm:$0xff]  ;;  %v1207_v54 = vld [vmem:[%s3098_s8 + $0x130] sm:$0xff] }
 0x271   :  { %v877_v55 = vpop.f32.mrf.mxu3 }
 0x272   :  { %v883_v40 = vadd.f32 %v877_v55, %v830_v58  ;;  %v1206_v55 = vld [vmem:[%s3098_s8 + $0x128] sm:$0xff]  ;;  %v1737_v58 = vld [vmem:[%s3099_s7 + $0x1c] sm:$0x3] }
 0x273   :  { %v921_v27 = vpop.f32.mrf.mxu0 }
 0x274   :  { %v933_v3 = vadd.f32 %v921_v27, %v880_v2  ;;  %v1038_v27 = vld [vmem:[%s3098_s8 + $0x68] sm:$0xff] }
 0x275   :  { %1054 = vmatpush.msra.mxu3 %v1038_v27  ;;  %v1262_v2 = vld [vmem:[%s3098_s8 + $0x168] sm:$0xff] }
 0x276   :  { %v941_v8 = vmul.f32 0.2, %v933_v3  ;;  %vm937_vm12 = vcmp.ge.f32.partialorder %v933_v3, 0.0 }
 0x277   :  { %1055 = vmatpush.msra.mxu3 %v1037_v28  ;;  %v1431_v28 = vld [vmem:[%s3098_s8 + $0x230] sm:$0xff] }
 0x278   :  { %v2591_v14 = vsel %vm937_vm12, %v933_v3, %v941_v8  ;;  %v1261_v3 = vld [vmem:[%s3098_s8 + $0x160] sm:$0xff] }
 0x279   :  { %1056 = vmatpush.msra.mxu3 %v1036_v30  ;;  %v1257_v8 = vld [vmem:[%s3098_s8 + $0x140] sm:$0xff]  ;;  %v1430_v30 = vld [vmem:[%s3098_s8 + $0x228] sm:$0xff] }
 0x27b   :  { %v924_v36 = vpop.f32.mrf.mxu0  ;;  %1057 = vmatpush.msra.mxu3 %v1035_v31  ;;  %v1429_v31 = vld [vmem:[%s3098_s8 + $0x220] sm:$0xff] }
 0x27c   :  { %v934_v60 = vadd.f32 %v924_v36, %v881_v29  ;;  %v1151_v36 = vld [vmem:[%s3098_s8 + $0xf0] sm:$0xff]  ;;  %v1204_v29 = vld [vmem:[%s3098_s8 + $0x118] sm:$0xff] }
 0x27d   :  { %1058 = vmatpush.msra.mxu3 %v1034_v32  ;;  %v1428_v32 = vld [vmem:[%s3098_s8 + $0x218] sm:$0xff] }
 0x27e   :  { %v942_v4 = vmul.f32 0.2, %v934_v60  ;;  %vm938_vm11 = vcmp.ge.f32.partialorder %v934_v60, 0.0 }
 0x27f   :  { %1059 = vmatpush.msra.mxu3 %v1033_v33  ;;  %v1488_v33 = vld [vmem:[%s3098_s8 + $0x278] sm:$0xff] }
 0x280   :  { %v2581_v11 = vsel %vm938_vm11, %v934_v60, %v942_v4  ;;  %v1202_v60 = vld [vmem:[%s3098_s8 + $0x108] sm:$0xff]  ;;  %v1259_v4 = vld [vmem:[%s3098_s8 + $0x150] sm:$0xff] }
 0x283   :  { %v927_v46 = vpop.f32.mrf.mxu0 }
 0x284   :  { %v935_v62 = vadd.f32 %v927_v46, %v882_v59  ;;  %v1793_v59 = vld [vmem:[%s3099_s7 + $0x1e] sm:$0x3] }
 0x286   :  { %v943_v5 = vmul.f32 0.2, %v935_v62  ;;  %vm939_vm10 = vcmp.ge.f32.partialorder %v935_v62, 0.0 }
 0x288   :  { %v2574_v9 = vsel %vm939_vm10, %v935_v62, %v943_v5  ;;  %v1263_v62 = vld [vmem:[%s3098_s8 + $0x170] sm:$0xff]  ;;  %v1260_v5 = vld [vmem:[%s3098_s8 + $0x158] sm:$0xff] }
 0x28b   :  { %v930_v63 = vpop.f32.mrf.mxu0 }
 0x28c   :  { %v936_v0 = vadd.f32 %v930_v63, %v883_v40  ;;  %v1264_v40 = vld [vmem:[%s3098_s8 + $0x178] sm:$0xff]  ;;  %v1203_v63 = vld [vmem:[%s3098_s8 + $0x110] sm:$0xff] }
 0x28e   :  { %vm940_vm9 = vcmp.ge.f32.partialorder %v936_v0, 0.0  ;;  %v944_v61 = vmul.f32 0.2, %v936_v0 }
 0x290   :  { %v2564_v6 = vsel %vm940_vm9, %v936_v0, %v944_v61  ;;  %v1201_v0 = vld [vmem:[%s3098_s8 + $0x100] sm:$0xff]  ;;  %v1320_v61 = vld [vmem:[%s3098_s8 + $0x1b8] sm:$0xff] }
 0x291   :  { %969 = vmatpush.msra.mxu2 %v2564_v6  ;;  %1193 = vmatpush.msra.mxu0 %v2564_v6 }
 0x293   :  { %970 = vmatpush.msra.mxu2 %v2574_v9  ;;  %1194 = vmatpush.msra.mxu0 %v2574_v9 }
 0x295   :  { %971 = vmatpush.msra.mxu2 %v2581_v11  ;;  %1195 = vmatpush.msra.mxu0 %v2581_v11 }
 0x297   :  { %972 = vmatpush.msra.mxu2 %v2591_v14  ;;  %1196 = vmatpush.msra.mxu0 %v2591_v14 }
 0x298   :  { %1948 = vmatmul.msk.f32.vlgmr.msra.gmra.mxu2 %vm209_vm3, %v953_v12  ;;  %v1315_v12 = vld [vmem:[%s3098_s8 + $0x190] sm:$0xff] }
 0x299   :  { %1025 = vmatpush.msrb.mxu2 %v2564_v6 }
 0x29b   :  { %1026 = vmatpush.msrb.mxu2 %v2574_v9 }
 0x29d   :  { %1027 = vmatpush.msrb.mxu2 %v2581_v11 }
 0x29f   :  { %1028 = vmatpush.msrb.mxu2 %v2591_v14 }
 0x2a0   :  { %1950 = vmatmul.msk.f32.vlgmr.msrb.gmra.mxu2 %vm209_vm3, %v1009_v19  ;;  %v1372_v19 = vld [vmem:[%s3098_s8 + $0x1d8] sm:$0xff] }
 0x2a1   :  { %1081 = vmatpush.msra.mxu2 %v2564_v6 }
 0x2a3   :  { %1082 = vmatpush.msra.mxu2 %v2574_v9 }
 0x2a5   :  { %1083 = vmatpush.msra.mxu2 %v2581_v11 }
 0x2a7   :  { %1084 = vmatpush.msra.mxu2 %v2591_v14 }
 0x2a8   :  { %1952 = vmatmul.msk.f32.vlgmr.msra.gmra.mxu2 %vm209_vm3, %v1065_v21  ;;  %v1371_v21 = vld [vmem:[%s3098_s8 + $0x1d0] sm:$0xff] }
 0x2a9   :  { %1137 = vmatpush.msrb.mxu2 %v2564_v6 }
 0x2ab   :  { %1138 = vmatpush.msrb.mxu2 %v2574_v9 }
 0x2ad   :  { %1139 = vmatpush.msrb.mxu2 %v2581_v11 }
 0x2af   :  { %1140 = vmatpush.msrb.mxu2 %v2591_v14 }
 0x2b0   :  { %1954 = vmatmul.msk.f32.vlgmr.msrb.gmra.mxu2 %vm209_vm3, %v1121_v22  ;;  %v1370_v22 = vld [vmem:[%s3098_s8 + $0x1c8] sm:$0xff] }
 0x2b1   :  { %1220 = vmatpush.msra.mxu2 %v1208_v53  ;;  %v1599_v53 = vld [vmem:[%s3098_s8 + $0x2f0] sm:$0xff] }
 0x2b3   :  { %1221 = vmatpush.msra.mxu2 %v1207_v54  ;;  %v1538_v54 = vld [vmem:[%s3098_s8 + $0x288] sm:$0xff] }
 0x2b5   :  { %1222 = vmatpush.msra.mxu2 %v1206_v55  ;;  %v1598_v55 = vld [vmem:[%s3098_s8 + $0x2e8] sm:$0xff] }
 0x2b7   :  { %1223 = vmatpush.msra.mxu2 %v1205_v26 }
 0x2b9   :  { %1224 = vmatpush.msra.mxu2 %v1204_v29  ;;  %v1595_v29 = vld [vmem:[%s3098_s8 + $0x2d0] sm:$0xff] }
 0x2bb   :  { %1225 = vmatpush.msra.mxu2 %v1203_v63  ;;  %v1654_v63 = vld [vmem:[%s3098_s8 + $0x328] sm:$0xff] }
 0x2bd   :  { %1226 = vmatpush.msra.mxu2 %v1202_v60  ;;  %v1653_v60 = vld [vmem:[%s3098_s8 + $0x320] sm:$0xff] }
 0x2bf   :  { %1227 = vmatpush.msra.mxu2 %v1201_v0  ;;  %v1652_v0 = vld [vmem:[%s3098_s8 + $0x318] sm:$0xff] }
 0x2c1   :  { %1332 = vmatpush.msrb.mxu2 %v1320_v61  ;;  %v1651_v61 = vld [vmem:[%s3098_s8 + $0x310] sm:$0xff] }
 0x31b   :  { %v974_v35 = vpop.f32.mrf.mxu2 }
 0x31c   :  { %1949 = vmatmul.msk.f32.vlgmr.msrb.gmra.mxu3 %vm94_vm1, %v974_v35  ;;  %v1427_v35 = vld [vmem:[%s3098_s8 + $0x210] sm:$0xff] }
 0x31d   :  { %1164 = vmatpush.msrb.mxu3 %v1152_v34 }
 0x31f   :  { %1165 = vmatpush.msrb.mxu3 %v1151_v36  ;;  %v1487_v36 = vld [vmem:[%s3098_s8 + $0x270] sm:$0xff] }
 0x321   :  { %1166 = vmatpush.msrb.mxu3 %v1150_v37  ;;  %v1426_v37 = vld [vmem:[%s3098_s8 + $0x208] sm:$0xff] }
 0x323   :  { %1167 = vmatpush.msrb.mxu3 %v1149_v38  ;;  %v1030_v41 = vpop.f32.mrf.mxu2  ;;  %v1486_v38 = vld [vmem:[%s3098_s8 + $0x268] sm:$0xff] }
 0x324   :  { %1951 = vmatmul.msk.f32.vlgmr.msra.gmra.mxu3 %vm94_vm1, %v1030_v41  ;;  %v1485_v41 = vld [vmem:[%s3098_s8 + $0x260] sm:$0xff] }
 0x325   :  { %1168 = vmatpush.msrb.mxu3 %v1148_v39  ;;  %v1425_v39 = vld [vmem:[%s3098_s8 + $0x200] sm:$0xff] }
 0x327   :  { %1169 = vmatpush.msrb.mxu3 %v1147_v42  ;;  %v1484_v42 = vld [vmem:[%s3098_s8 + $0x258] sm:$0xff] }
 0x329   :  { %1170 = vmatpush.msrb.mxu3 %v1146_v43  ;;  %v1544_v43 = vld [vmem:[%s3098_s8 + $0x2b8] sm:$0xff] }
 0x32b   :  { %v1086_v17 = vpop.f32.mrf.mxu2  ;;  %1171 = vmatpush.msrb.mxu3 %v1145_v44 }
 0x32c   :  { %1953 = vmatmul.msk.f32.vlgmr.msrb.gmra.mxu0 %vm94_vm1, %v1086_v17  ;;  %v1483_v17 = vld [vmem:[%s3098_s8 + $0x250] sm:$0xff] }
 0x32d   :  { %1249 = vmatpush.msrb.mxu0 %v2564_v6  ;;  %1276 = vmatpush.msra.mxu3 %v1264_v40  ;;  %v1655_v40 = vld [vmem:[%s3098_s8 + $0x330] sm:$0xff] }
 0x32f   :  { %1250 = vmatpush.msrb.mxu0 %v2574_v9  ;;  %1277 = vmatpush.msra.mxu3 %v1263_v62  ;;  %v1594_v62 = vld [vmem:[%s3098_s8 + $0x2c8] sm:$0xff] }
 0x331   :  { %1251 = vmatpush.msrb.mxu0 %v2581_v11  ;;  %1278 = vmatpush.msra.mxu3 %v1262_v2  ;;  %v1593_v2 = vld [vmem:[%s3098_s8 + $0x2c0] sm:$0xff] }
 0x333   :  { %1252 = vmatpush.msrb.mxu0 %v2591_v14  ;;  %v1142_v46 = vpop.f32.mrf.mxu2  ;;  %1279 = vmatpush.msra.mxu3 %v1261_v3  ;;  %v1712_v3 = vld [vmem:[%s3098_s8 + $0x378] sm:$0xff] }
 0x334   :  { %1956 = vmatmul.msk.f32.vlgmr.msra.gmra.mxu0 %vm209_vm3, %v1177_v45  ;;  %1955 = vmatmul.msk.f32.vlgmr.msrb.gmra.mxu3 %vm94_vm1, %v1142_v46  ;;  %v1543_v45 = vld [vmem:[%s3098_s8 + $0x2b0] sm:$0xff]  ;;  %v1482_v46 = vld [vmem:[%s3098_s8 + $0x248] sm:$0xff] }
 0x335   :  { %1305 = vmatpush.msra.mxu0 %v2564_v6  ;;  %1280 = vmatpush.msra.mxu3 %v1260_v5 }
 0x337   :  { %1306 = vmatpush.msra.mxu0 %v2574_v9  ;;  %1281 = vmatpush.msra.mxu3 %v1259_v4  ;;  %v1711_v4 = vld [vmem:[%s3098_s8 + $0x370] sm:$0xff] }
 0x339   :  { %1307 = vmatpush.msra.mxu0 %v2581_v11  ;;  %1282 = vmatpush.msra.mxu3 %v1258_v7  ;;  %v1649_v7 = vld [vmem:[%s3098_s8 + $0x300] sm:$0xff] }
 0x33b   :  { %1308 = vmatpush.msra.mxu0 %v2591_v14  ;;  %1283 = vmatpush.msra.mxu3 %v1257_v8  ;;  %v1709_v8 = vld [vmem:[%s3098_s8 + $0x360] sm:$0xff] }
 0x33c   :  { %1958 = vmatmul.msk.f32.vlgmr.msrb.gmra.mxu0 %vm209_vm3, %v1233_v47  ;;  %v1542_v47 = vld [vmem:[%s3098_s8 + $0x2a8] sm:$0xff] }
 0x33d   :  { %1361 = vmatpush.msrb.mxu0 %v2564_v6 }
 0x33f   :  { %1362 = vmatpush.msrb.mxu0 %v2574_v9 }
 0x341   :  { %1363 = vmatpush.msrb.mxu0 %v2581_v11 }
 0x343   :  { %1364 = vmatpush.msrb.mxu0 %v2591_v14 }
 0x344   :  { %1960 = vmatmul.msk.f32.vlgmr.msra.gmra.mxu0 %vm209_vm3, %v1289_v48  ;;  %v1481_v48 = vld [vmem:[%s3098_s8 + $0x240] sm:$0xff] }
 0x345   :  { %1417 = vmatpush.msra.mxu0 %v2564_v6 }
 0x347   :  { %1418 = vmatpush.msra.mxu0 %v2574_v9 }
 0x349   :  { %1419 = vmatpush.msra.mxu0 %v2581_v11 }
 0x34b   :  { %1420 = vmatpush.msra.mxu0 %v2591_v14 }
 0x34c   :  { %1962 = vmatmul.msk.f32.vlgmr.msrb.gmra.mxu0 %vm209_vm3, %v1345_v20  ;;  %v1541_v20 = vld [vmem:[%s3098_s8 + $0x2a0] sm:$0xff] }
 0x34d   :  { %1473 = vmatpush.msrb.mxu0 %v2564_v6 }
 0x34f   :  { %1474 = vmatpush.msrb.mxu0 %v2574_v9 }
 0x351   :  { %1475 = vmatpush.msrb.mxu0 %v2581_v11 }
 0x353   :  { %1476 = vmatpush.msrb.mxu0 %v2591_v14 }
 0x354   :  { %1964 = vmatmul.msk.f32.vlgmr.msra.gmra.mxu0 %vm209_vm3, %v1401_v49  ;;  %v1540_v49 = vld [vmem:[%s3098_s8 + $0x298] sm:$0xff] }
 0x355   :  { %1529 = vmatpush.msra.mxu0 %v2564_v6 }
 0x357   :  { %1530 = vmatpush.msra.mxu0 %v2574_v9 }
 0x359   :  { %1531 = vmatpush.msra.mxu0 %v2581_v11 }
 0x35b   :  { %1532 = vmatpush.msra.mxu0 %v2591_v14 }
 0x35c   :  { %1966 = vmatmul.msk.f32.vlgmr.msrb.gmra.mxu0 %vm209_vm3, %v1457_v50  ;;  %v1600_v50 = vld [vmem:[%s3098_s8 + $0x2f8] sm:$0xff] }
 0x35d   :  { %1585 = vmatpush.msrb.mxu0 %v2564_v6 }
 0x35f   :  { %1586 = vmatpush.msrb.mxu0 %v2574_v9 }
 0x361   :  { %1587 = vmatpush.msrb.mxu0 %v2581_v11 }
 0x363   :  { %1588 = vmatpush.msrb.mxu0 %v2591_v14 }
 0x364   :  { %1968 = vmatmul.msk.f32.vlgmr.msra.gmra.mxu0 %vm209_vm3, %v1513_v51 }
 0x365   :  { %1641 = vmatpush.msra.mxu0 %v2564_v6 }
 0x367   :  { %1642 = vmatpush.msra.mxu0 %v2574_v9 }
 0x369   :  { %1643 = vmatpush.msra.mxu0 %v2581_v11 }
 0x36b   :  { %1644 = vmatpush.msra.mxu0 %v2591_v14 }
 0x36c   :  { %1970 = vmatmul.msk.f32.vlgmr.msrb.gmra.mxu0 %vm209_vm3, %v1569_v52  ;;  %v1539_v52 = vld [vmem:[%s3098_s8 + $0x290] sm:$0xff] }
 0x36d   :  { %1697 = vmatpush.msrb.mxu0 %v2564_v6 }
 0x36f   :  { %1698 = vmatpush.msrb.mxu0 %v2574_v9 }
 0x371   :  { %1699 = vmatpush.msrb.mxu0 %v2581_v11 }
 0x373   :  { %1700 = vmatpush.msrb.mxu0 %v2591_v14 }
 0x374   :  { %1972 = vmatmul.msk.f32.vlgmr.msra.gmra.mxu0 %vm209_vm3, %v1625_v56  ;;  %v1537_v56 = vld [vmem:[%s3098_s8 + $0x280] sm:$0xff] }
 0x375   :  { %1753 = vmatpush.msra.mxu0 %v2564_v6 }
 0x377   :  { %1754 = vmatpush.msra.mxu0 %v2574_v9 }
 0x379   :  { %1755 = vmatpush.msra.mxu0 %v2581_v11 }
 0x37b   :  { %1756 = vmatpush.msra.mxu0 %v2591_v14 }
 0x37c   :  { %1974 = vmatmul.msk.f32.vlgmr.msrb.gmra.mxu0 %vm209_vm3, %v1681_v57  ;;  %v1597_v57 = vld [vmem:[%s3098_s8 + $0x2e0] sm:$0xff] }
 0x37d   :  { %1809 = vmatpush.msrb.mxu0 %v2564_v6  ;;  %v1319_v6 = vld [vmem:[%s3098_s8 + $0x1b0] sm:$0xff] }
 0x37e   :  { %1333 = vmatpush.msrb.mxu2 %v1319_v6  ;;  %v1650_v6 = vld [vmem:[%s3098_s8 + $0x308] sm:$0xff] }
 0x37f   :  { %1810 = vmatpush.msrb.mxu0 %v2574_v9  ;;  %v1317_v9 = vld [vmem:[%s3098_s8 + $0x1a0] sm:$0xff] }
 0x380   :  { %1334 = vmatpush.msrb.mxu2 %v1318_v1  ;;  %v1710_v1 = vld [vmem:[%s3098_s8 + $0x368] sm:$0xff] }
 0x381   :  { %1811 = vmatpush.msrb.mxu0 %v2581_v11  ;;  %v1376_v11 = vld [vmem:[%s3098_s8 + $0x1f8] sm:$0xff] }
 0x382   :  { %1335 = vmatpush.msrb.mxu2 %v1317_v9  ;;  %1388 = vmatpush.msrb.mxu3 %v1376_v11  ;;  %v1708_v9 = vld [vmem:[%s3098_s8 + $0x358] sm:$0xff] }
 0x383   :  { %1812 = vmatpush.msrb.mxu0 %v2591_v14  ;;  %v1374_v14 = vld [vmem:[%s3098_s8 + $0x1e8] sm:$0xff] }
 0x384   :  { %1976 = vmatmul.msk.f32.vlgmr.msra.gmra.mxu0 %vm209_vm3, %v1737_v58  ;;  %1336 = vmatpush.msrb.mxu2 %v1316_v10  ;;  %v1596_v58 = vld [vmem:[%s3098_s8 + $0x2d8] sm:$0xff] }
 0x385   :  { %1389 = vmatpush.msrb.mxu3 %v1375_v13  ;;  %v1768_v10 = vld [vmem:[%s3098_s8 + $0x3b8] sm:$0xff]  ;;  %v1767_v13 = vld [vmem:[%s3098_s8 + $0x3b0] sm:$0xff] }
 0x386   :  { %1337 = vmatpush.msrb.mxu2 %v1315_v12  ;;  %v1707_v12 = vld [vmem:[%s3098_s8 + $0x350] sm:$0xff] }
 0x387   :  { %1390 = vmatpush.msrb.mxu3 %v1374_v14  ;;  %v1706_v14 = vld [vmem:[%s3098_s8 + $0x348] sm:$0xff] }
 0x388   :  { %1338 = vmatpush.msrb.mxu2 %v1314_v15  ;;  %v1766_v15 = vld [vmem:[%s3098_s8 + $0x3a8] sm:$0xff] }
 0x389   :  { %1391 = vmatpush.msrb.mxu3 %v1373_v18  ;;  %v1765_v18 = vld [vmem:[%s3098_s8 + $0x3a0] sm:$0xff] }
 0x38a   :  { %1339 = vmatpush.msrb.mxu2 %v1313_v16  ;;  %v1705_v16 = vld [vmem:[%s3098_s8 + $0x340] sm:$0xff] }
 0x38b   :  { %1392 = vmatpush.msrb.mxu3 %v1372_v19  ;;  %v1764_v19 = vld [vmem:[%s3098_s8 + $0x398] sm:$0xff] }
 0x38c   :  { %1978 = vmatmul.msk.f32.vlgmr.msrb.gmra.mxu0 %vm209_vm3, %v1793_v59  ;;  %v1656_v59 = vld [vmem:[%s3098_s8 + $0x338] sm:$0xff] }
 0x38d   :  { %1393 = vmatpush.msrb.mxu3 %v1371_v21  ;;  %v1824_v21 = vld [vmem:[%s3098_s8 + $0x3f8] sm:$0xff] }
 0x38f   :  { %1394 = vmatpush.msrb.mxu3 %v1370_v22 }
 0x391   :  { %1395 = vmatpush.msrb.mxu3 %v1369_v24  ;;  %v1763_v24 = vld [vmem:[%s3098_s8 + $0x390] sm:$0xff] }
 0x3a9   :  { %v2869_v23 = vpop.f32.mrf.mxu0 }
 0x3b1   :  { %v1198_v27 = vpop.f32.mrf.mxu0 }
 0x3b2   :  { %1957 = vmatmul.msk.f32.vlgmr.msra.gmra.mxu2 %vm94_vm1, %v1198_v27  ;;  %v1762_v27 = vld [vmem:[%s3098_s8 + $0x388] sm:$0xff] }
 0x3b3   :  { %1444 = vmatpush.msra.mxu2 %v1432_v25  ;;  %v1823_v25 = vld [vmem:[%s3098_s8 + $0x3f0] sm:$0xff] }
 0x3b5   :  { %1445 = vmatpush.msra.mxu2 %v1431_v28  ;;  %v1822_v28 = vld [vmem:[%s3098_s8 + $0x3e8] sm:$0xff] }
 0x3b7   :  { %1446 = vmatpush.msra.mxu2 %v1430_v30  ;;  %v1761_v30 = vld [vmem:[%s3098_s8 + $0x380] sm:$0xff] }
 0x3b9   :  { %v1254_v34 = vpop.f32.mrf.mxu0  ;;  %1447 = vmatpush.msra.mxu2 %v1429_v31  ;;  %v1821_v31 = vld [vmem:[%s3098_s8 + $0x3e0] sm:$0xff] }
 0x3ba   :  { %1959 = vmatmul.msk.f32.vlgmr.msra.gmra.mxu3 %vm94_vm1, %v1254_v34  ;;  %v1819_v34 = vld [vmem:[%s3098_s8 + $0x3d0] sm:$0xff] }
 0x3bb   :  { %1448 = vmatpush.msra.mxu2 %v1428_v32  ;;  %1500 = vmatpush.msra.mxu3 %v1488_v33  ;;  %v1820_v32 = vld [vmem:[%s3098_s8 + $0x3d8] sm:$0xff] }
 0x3bd   :  { %1449 = vmatpush.msra.mxu2 %v1427_v35  ;;  %1501 = vmatpush.msra.mxu3 %v1487_v36  ;;  %v1818_v35 = vld [vmem:[%s3098_s8 + $0x3c8] sm:$0xff]  ;;  %v1817_v36 = vld [vmem:[%s3098_s8 + $0x3c0] sm:$0xff] }
 0x3bf   :  { %1450 = vmatpush.msra.mxu2 %v1426_v37  ;;  %1502 = vmatpush.msra.mxu3 %v1486_v38 }
 0x3c1   :  { %v1310_v44 = vpop.f32.mrf.mxu0  ;;  %1451 = vmatpush.msra.mxu2 %v1425_v39  ;;  %1503 = vmatpush.msra.mxu3 %v1485_v41  ;;  %v1005_v41 = vpop.f32.mrf.mxu3 }
 0x3c2   :  { %1961 = vmatmul.msk.f32.vlgmr.msrb.gmra.mxu2 %vm94_vm1, %v1310_v44 }
 0x3c3   :  { %1504 = vmatpush.msra.mxu3 %v1484_v42  ;;  %1556 = vmatpush.msrb.mxu2 %v1544_v43 }
 0x3c5   :  { %1505 = vmatpush.msra.mxu3 %v1483_v17  ;;  %1557 = vmatpush.msrb.mxu2 %v1543_v45 }
 0x3c7   :  { %1506 = vmatpush.msra.mxu3 %v1482_v46  ;;  %1558 = vmatpush.msrb.mxu2 %v1542_v47  ;;  %v1993_v46 = vld [vmem:[%s3100_s9] ss:$0 sm:$0xff] }
 0x3c9   :  { %v1366_v51 = vpop.f32.mrf.mxu0  ;;  %1507 = vmatpush.msra.mxu3 %v1481_v48  ;;  %1559 = vmatpush.msrb.mxu2 %v1541_v20  ;;  %v1061_v42 = vpop.f32.mrf.mxu3  ;;  %v1008_v48 = vadd.f32 %v1993_v46, %v1005_v41 }
 0x3ca   :  { %1963 = vmatmul.msk.f32.vlgmr.msrb.gmra.mxu3 %vm94_vm1, %v1366_v51 }
 0x3cb   :  { %1560 = vmatpush.msrb.mxu2 %v1540_v49  ;;  %1612 = vmatpush.msrb.mxu3 %v1600_v50  ;;  %v1064_v20 = vadd.f32 %v1061_v42, %v1008_v48 }
 0x3cd   :  { %1561 = vmatpush.msrb.mxu2 %v1539_v52  ;;  %1613 = vmatpush.msrb.mxu3 %v1599_v53  ;;  %v1120_v50 = vadd.f32 %v2869_v23, %v1064_v20  ;;  %v17_v53 = vstv %s3102_s11 }
 0x3ce   :  { %18 = vst [vmem:[#allocation2] sm:$0x1] %v17_v53 }
 0x3cf   :  { %1562 = vmatpush.msrb.mxu2 %v1538_v54  ;;  %1614 = vmatpush.msrb.mxu3 %v1598_v55 }
 0x3d1   :  { %v1422_v26 = vpop.f32.mrf.mxu0  ;;  %1563 = vmatpush.msrb.mxu2 %v1537_v56  ;;  %1615 = vmatpush.msrb.mxu3 %v1597_v57  ;;  %v1173_v43 = vpop.f32.mrf.mxu3 }
 0x3d2   :  { %1965 = vmatmul.msk.f32.vlgmr.msra.gmra.mxu2 %vm94_vm1, %v1422_v26  ;;  %v1176_v52 = vadd.f32 %v1173_v43, %v1120_v50 }
 0x3d3   :  { %1616 = vmatpush.msrb.mxu3 %v1596_v58  ;;  %1668 = vmatpush.msra.mxu2 %v1656_v59 }
 0x3d5   :  { %1617 = vmatpush.msrb.mxu3 %v1595_v29  ;;  %1669 = vmatpush.msra.mxu2 %v1655_v40 }
 0x3d7   :  { %1618 = vmatpush.msrb.mxu3 %v1594_v62  ;;  %1670 = vmatpush.msra.mxu2 %v1654_v63 }
 0x3d9   :  { %v1478_v5 = vpop.f32.mrf.mxu0  ;;  %1619 = vmatpush.msrb.mxu3 %v1593_v2  ;;  %1671 = vmatpush.msra.mxu2 %v1653_v60 }
 0x3da   :  { %1967 = vmatmul.msk.f32.vlgmr.msra.gmra.mxu3 %vm94_vm1, %v1478_v5 }
 0x3db   :  { %1672 = vmatpush.msra.mxu2 %v1652_v0  ;;  %1724 = vmatpush.msra.mxu3 %v1712_v3 }
 0x3dd   :  { %1673 = vmatpush.msra.mxu2 %v1651_v61  ;;  %1725 = vmatpush.msra.mxu3 %v1711_v4  ;;  %v1994_v4 = vld [vmem:[%s3101_s10] ss:$0 sm:$0xff] }
 0x3df   :  { %1674 = vmatpush.msra.mxu2 %v1650_v6  ;;  %1726 = vmatpush.msra.mxu3 %v1710_v1 }
 0x3e1   :  { %v1534_v11 = vpop.f32.mrf.mxu0  ;;  %1675 = vmatpush.msra.mxu2 %v1649_v7  ;;  %1727 = vmatpush.msra.mxu3 %v1709_v8 }
 0x3e2   :  { %1969 = vmatmul.msk.f32.vlgmr.msrb.gmra.mxu2 %vm94_vm1, %v1534_v11 }
 0x3e3   :  { %1728 = vmatpush.msra.mxu3 %v1708_v9  ;;  %1780 = vmatpush.msrb.mxu2 %v1768_v10  ;;  %v1995_v9 = vld [vmem:[#allocation2] ss:$0 sm:$0xff] }
 0x3e5   :  { %1729 = vmatpush.msra.mxu3 %v1707_v12  ;;  %1781 = vmatpush.msrb.mxu2 %v1767_v13 }
 0x3e7   :  { %1730 = vmatpush.msra.mxu3 %v1706_v14  ;;  %1782 = vmatpush.msrb.mxu2 %v1766_v15 }
 0x3e9   :  { %v1590_v22 = vpop.f32.mrf.mxu0  ;;  %1731 = vmatpush.msra.mxu3 %v1705_v16  ;;  %1783 = vmatpush.msrb.mxu2 %v1765_v18 }
 0x3ea   :  { %1971 = vmatmul.msk.f32.vlgmr.msrb.gmra.mxu3 %vm94_vm1, %v1590_v22 }
 0x3eb   :  { %1784 = vmatpush.msrb.mxu2 %v1764_v19  ;;  %1836 = vmatpush.msrb.mxu3 %v1824_v21 }
 0x3ed   :  { %1785 = vmatpush.msrb.mxu2 %v1763_v24  ;;  %1837 = vmatpush.msrb.mxu3 %v1823_v25 }
 0x3ef   :  { %1786 = vmatpush.msrb.mxu2 %v1762_v27  ;;  %1838 = vmatpush.msrb.mxu3 %v1822_v28 }
 0x3f1   :  { %v1646_v33 = vpop.f32.mrf.mxu0  ;;  %1787 = vmatpush.msrb.mxu2 %v1761_v30  ;;  %1839 = vmatpush.msrb.mxu3 %v1821_v31 }
 0x3f2   :  { %1973 = vmatmul.msk.f32.vlgmr.msra.gmra.mxu2 %vm94_vm1, %v1646_v33 }
 0x3f3   :  { %1840 = vmatpush.msrb.mxu3 %v1820_v32 }
 0x3f5   :  { %1841 = vmatpush.msrb.mxu3 %v1819_v34 }
 0x3f7   :  { %1842 = vmatpush.msrb.mxu3 %v1818_v35 }
 0x3f9   :  { %v1702_v37 = vpop.f32.mrf.mxu0  ;;  %1843 = vmatpush.msrb.mxu3 %v1817_v36 }
 0x3fa   :  { %1975 = vmatmul.msk.f32.vlgmr.msra.gmra.mxu3 %vm94_vm1, %v1702_v37 }
 0x401   :  { %v1758_v38 = vpop.f32.mrf.mxu0 }
 0x402   :  { %1977 = vmatmul.msk.f32.vlgmr.msrb.gmra.mxu2 %vm94_vm1, %v1758_v38 }
 0x409   :  { %v1814_v39 = vpop.f32.mrf.mxu0 }
 0x40a   :  { %1979 = vmatmul.msk.f32.vlgmr.msrb.gmra.mxu3 %vm94_vm1, %v1814_v39 }
 0x435   :  { %v1229_v44 = vpop.f32.mrf.mxu2 }
 0x436   :  { %v1232_v54 = vadd.f32 %v1229_v44, %v1176_v52 }
 0x43d   :  { %v1285_v17 = vpop.f32.mrf.mxu3 }
 0x43e   :  { %v1288_v56 = vadd.f32 %v1285_v17, %v1232_v54 }
 0x445   :  { %v1341_v45 = vpop.f32.mrf.mxu2 }
 0x446   :  { %v1344_v57 = vadd.f32 %v1341_v45, %v1288_v56 }
 0x44d   :  { %v1397_v47 = vpop.f32.mrf.mxu3 }
 0x44e   :  { %v1400_v59 = vadd.f32 %v1397_v47, %v1344_v57 }
 0x455   :  { %v1453_v49 = vpop.f32.mrf.mxu2 }
 0x456   :  { %v1456_v26 = vadd.f32 %v1453_v49, %v1400_v59 }
 0x45d   :  { %v1509_v51 = vpop.f32.mrf.mxu3 }
 0x45e   :  { %v1512_v40 = vadd.f32 %v1509_v51, %v1456_v26 }
 0x465   :  { %v1565_v55 = vpop.f32.mrf.mxu2 }
 0x466   :  { %v1568_v62 = vadd.f32 %v1565_v55, %v1512_v40 }
 0x46d   :  { %v1621_v58 = vpop.f32.mrf.mxu3 }
 0x46e   :  { %v1624_v2 = vadd.f32 %v1621_v58, %v1568_v62 }
 0x475   :  { %v1677_v29 = vpop.f32.mrf.mxu2 }
 0x476   :  { %v1680_v23 = vadd.f32 %v1677_v29, %v1624_v2 }
 0x47d   :  { %v1733_v63 = vpop.f32.mrf.mxu3 }
 0x47e   :  { %v1736_v0 = vadd.f32 %v1733_v63, %v1680_v23 }
 0x485   :  { %v1789_v60 = vpop.f32.mrf.mxu2 }
 0x486   :  { %v1792_v3 = vadd.f32 %v1789_v60, %v1736_v0 }
 0x48d   :  { %v1845_v5 = vpop.f32.mrf.mxu3 }
 0x48e   :  { %v1848_v61 = vadd.f32 %v1845_v5, %v1792_v3 }
 0x490   :  { %vm1849_vm13 = vcmp.ge.f32.partialorder %v1848_v61, 0.0  ;;  %v1850_v6 = vmul.f32 0.2, %v1848_v61 }
 0x492   :  { %v1851_v1 = vsel %vm1849_vm13, %v1848_v61, %v1850_v6 }
 0x493   :  { %v1856_v7 = vmul.f32 %v1994_v4, %v1851_v1 }
 0x495   :  { %v1858_v8 = vsel %vm1857_vm14, %v1856_v7, 0.0 }
 0x496   :  { %1859 = vadd.xlane.f32.xlu0 %v1858_v8 }
 0x509   :  { %v1860_v10 = vpop.xlane.xlu0 %1859 }
 0x50a   :  { %v1865_v11 = vadd.f32 %v1995_v9, %v1860_v10 }
 0x50c   :  { %1867 = vst.msk [vmem:[%s3103_s12] sm:$0x3] %vm1866_vm15, %v1865_v11 }

</bundles_post_ra>
